<compile_context>
chip_gen: v7x
topology: tpu7x:2x2x1
jax: 0.10.0
libtpu: 0.0.40
codegen_flags: <defaults>
</compile_context>

<pallas_src>
import jax
import jax.numpy as jnp
from jax import lax
from jax.experimental import pallas as pl
from jax.experimental.pallas import tpu as pltpu

BN_EPS = 1e-5
LANE = 128
SUBLANE = 8


def _round_up(n, m):
    return ((n + m - 1) // m) * m


def _vmem_limit_bytes(resident_bytes, streamed_bytes):
    # Resident weights/bias/stats + double-buffered streamed tiles + slack.
    # TODO(synk): derive per TPU generation (v7x has only 64 MiB physical VMEM;
    # shrink the batch tile there rather than raising this limit).
    need = resident_bytes + 2 * streamed_bytes + (4 << 20)
    return int(min(100 * 2**20, max(32 * 2**20, need)))


def _row_mask(tile_idx, tb, b_true):
    """Mask that is True for rows belonging to the real (unpadded) batch."""
    rows = tile_idx * tb + lax.broadcasted_iota(jnp.int32, (tb, 1), 0)
    return rows < b_true


# ---------------------------------------------------------------------------
# Hidden layer kernel: [deferred BN of prev layer] -> Linear -> sigmoid,
# plus accumulation of this layer's BN statistics across batch tiles.
# ---------------------------------------------------------------------------
def _make_hidden_kernel(*, tb, b_true, apply_input_bn, out_dtype):
    inv_b = 1.0 / float(b_true)

    def kernel(*refs):
        if apply_input_bn:
            x_ref, stin_ref, w_ref, b_ref, y_ref, stout_ref, sum_sc, sq_sc = refs
        else:
            x_ref, w_ref, b_ref, y_ref, stout_ref, sum_sc, sq_sc = refs
        i = pl.program_id(0)

        @pl.when(i == 0)
        def _init():
            sum_sc[...] = jnp.zeros_like(sum_sc)
            sq_sc[...] = jnp.zeros_like(sq_sc)

        x = x_ref[...]
        if apply_input_bn:
            # Deferred BatchNorm of the previous hidden layer (f32 stats).
            xf = (x.astype(jnp.float32) - stin_ref[0:1, :]) * stin_ref[1:2, :]
            x = xf.astype(x_ref.dtype)

        # Linear on the MXU, f32 accumulation, f32 bias.
        z = jnp.dot(x, w_ref[...], preferred_element_type=jnp.float32) + b_ref[...]
        # Sigmoid via tanh: a single EUP op instead of exp + reciprocal.
        s = 0.5 * (1.0 + jnp.tanh(0.5 * z))
        s_store = s.astype(out_dtype)
        y_ref[...] = s_store

        # Masked one-pass BN statistics (safe: sigmoid output is in [0, 1]),
        # accumulated in f32 across batch tiles.  The batch reduction runs on
        # the MXU (all-ones matmul) to keep it off the XLU.
        sf = s_store.astype(jnp.float32)
        sm = jnp.where(_row_mask(i, tb, b_true), sf, 0.0)
        ones = jnp.ones((SUBLANE, tb), jnp.float32)
        sum_sc[...] += jnp.dot(ones, sm, preferred_element_type=jnp.float32)
        sq_sc[...] += jnp.dot(ones, sm * sm, preferred_element_type=jnp.float32)

        @pl.when(i == pl.num_programs(0) - 1)
        def _finalize():
            mean = sum_sc[0:1, :] * inv_b
            var = jnp.maximum(sq_sc[0:1, :] * inv_b - mean * mean, 0.0)
            stout_ref[0:1, :] = mean
            stout_ref[1:2, :] = lax.rsqrt(var + BN_EPS)

    return kernel


# ---------------------------------------------------------------------------
# Final layer kernel: [deferred BN of prev layer] -> BatchNorm -> Linear.
# Two-phase grid: phase 0 accumulates sum/sumsq, phase 1 normalizes + matmuls.
# ---------------------------------------------------------------------------
def _make_final_kernel(*, tb, b_true, apply_input_bn, matmul_dtype):
    inv_b = 1.0 / float(b_true)

    def kernel(*refs):
        if apply_input_bn:
            x_ref, stin_ref, w_ref, b_ref, y_ref, sum_sc, sq_sc = refs
        else:
            x_ref, w_ref, b_ref, y_ref, sum_sc, sq_sc = refs
        phase = pl.program_id(0)
        i = pl.program_id(1)

        @pl.when((phase == 0) & (i == 0))
        def _init():
            sum_sc[...] = jnp.zeros_like(sum_sc)
            sq_sc[...] = jnp.zeros_like(sq_sc)

        a = x_ref[...].astype(jnp.float32)
        if apply_input_bn:
            # Deferred BatchNorm of the previous hidden layer's output.
            a = (a - stin_ref[0:1, :]) * stin_ref[1:2, :]

        # Phase 0: masked sum / sum-of-squares, accumulated across batch tiles
        # (MXU reduction).  Only the scratch writes are gated so the matmuls
        # stay out of the scf.if regions.
        am = jnp.where(_row_mask(i, tb, b_true), a, 0.0)
        ones = jnp.ones((SUBLANE, tb), jnp.float32)
        inc_sum = jnp.dot(ones, am, preferred_element_type=jnp.float32)
        inc_sq = jnp.dot(ones, am * am, preferred_element_type=jnp.float32)

        @pl.when(phase == 0)
        def _accumulate():
            sum_sc[...] += inc_sum
            sq_sc[...] += inc_sq

        # Phase 1: normalize with the completed statistics and run the Linear.
        mean = sum_sc[0:1, :] * inv_b
        var = jnp.maximum(sq_sc[0:1, :] * inv_b - mean * mean, 0.0)
        xn = (a - mean) * lax.rsqrt(var + BN_EPS)
        y = jnp.dot(xn.astype(matmul_dtype), w_ref[...],
                    preferred_element_type=jnp.float32) + b_ref[...]

        @pl.when(phase == 1)
        def _store():
            y_ref[...] = y.astype(y_ref.dtype)

    return kernel


# ---------------------------------------------------------------------------
# pallas_call wrappers (one per layer).
# ---------------------------------------------------------------------------
def _hidden_layer_call(x, stats_in, w, b, *, tb, b_true, matmul_dtype):
    bp, din_p = x.shape
    dout_p = w.shape[1]
    nbt = bp // tb
    apply_bn = stats_in is not None
    itemsize = jnp.dtype(matmul_dtype).itemsize

    kernel = _make_hidden_kernel(tb=tb, b_true=b_true, apply_input_bn=apply_bn,
                                 out_dtype=matmul_dtype)

    in_specs = [pl.BlockSpec((tb, din_p), lambda i: (i, 0))]     # streamed x
    args = [x]
    if apply_bn:
        in_specs.append(pl.BlockSpec((2, din_p), lambda i: (0, 0)))  # resident
        args.append(stats_in)
    in_specs += [
        pl.BlockSpec((din_p, dout_p), lambda i: (0, 0)),         # resident W
        pl.BlockSpec((1, dout_p), lambda i: (0, 0)),             # resident b
    ]
    args += [w, b]

    resident = din_p * dout_p * itemsize + dout_p * 4 + 2 * din_p * 4
    streamed = tb * (din_p + dout_p) * itemsize

    y, stats_out = pl.pallas_call(
        kernel,
        grid=(nbt,),
        in_specs=in_specs,
        out_specs=(
            pl.BlockSpec((tb, dout_p), lambda i: (i, 0)),
            pl.BlockSpec((2, dout_p), lambda i: (0, 0)),
        ),
        out_shape=(
            jax.ShapeDtypeStruct((bp, dout_p), matmul_dtype),
            jax.ShapeDtypeStruct((2, dout_p), jnp.float32),
        ),
        scratch_shapes=[
            pltpu.VMEM((SUBLANE, dout_p), jnp.float32),
            pltpu.VMEM((SUBLANE, dout_p), jnp.float32),
        ],
        compiler_params=pltpu.CompilerParams(
            dimension_semantics=("arbitrary",),
            vmem_limit_bytes=_vmem_limit_bytes(resident, streamed),
        ),
    )(*args)
    return y, stats_out


def _final_layer_call(x, stats_in, w, b, *, tb, b_true, matmul_dtype):
    bp, din_p = x.shape
    dout_p = w.shape[1]
    nbt = bp // tb
    apply_bn = stats_in is not None
    itemsize = jnp.dtype(matmul_dtype).itemsize

    kernel = _make_final_kernel(tb=tb, b_true=b_true, apply_input_bn=apply_bn,
                                matmul_dtype=matmul_dtype)

    in_specs = [pl.BlockSpec((tb, din_p), lambda p, i: (i, 0))]
    args = [x]
    if apply_bn:
        in_specs.append(pl.BlockSpec((2, din_p), lambda p, i: (0, 0)))
        args.append(stats_in)
    in_specs += [
        pl.BlockSpec((din_p, dout_p), lambda p, i: (0, 0)),
        pl.BlockSpec((1, dout_p), lambda p, i: (0, 0)),
    ]
    args += [w, b]

    resident = din_p * dout_p * itemsize + dout_p * 4 + 2 * din_p * 4
    streamed = tb * din_p * itemsize + tb * dout_p * 4

    y = pl.pallas_call(
        kernel,
        grid=(2, nbt),                       # (phase, batch tile)
        in_specs=in_specs,
        out_specs=pl.BlockSpec((tb, dout_p), lambda p, i: (i, 0)),
        out_shape=jax.ShapeDtypeStruct((bp, dout_p), jnp.float32),
        scratch_shapes=[
            pltpu.VMEM((SUBLANE, din_p), jnp.float32),
            pltpu.VMEM((SUBLANE, din_p), jnp.float32),
        ],
        compiler_params=pltpu.CompilerParams(
            dimension_semantics=("arbitrary", "arbitrary"),
            vmem_limit_bytes=_vmem_limit_bytes(resident, streamed),
        ),
    )(*args)
    return y


# ---------------------------------------------------------------------------
# Parameter preparation (run ONCE, outside the jitted forward).
# ---------------------------------------------------------------------------
def pad_mlp_params(params, matmul_dtype=jnp.float32):
    """Zero-pad feature dims to 128 lanes and cast weights to matmul_dtype.

    Call this once per tower outside the training/forward step so the hot
    path never re-pads parameters (weights [in, out], bias [1, out])."""
    padded = []
    for w, b in params:
        din_p = _round_up(w.shape[0], LANE)
        dout_p = _round_up(w.shape[1], LANE)
        wp = jnp.pad(w.astype(matmul_dtype),
                     ((0, din_p - w.shape[0]), (0, dout_p - w.shape[1])))
        bp = jnp.pad(b.astype(jnp.float32).reshape(1, -1),
                     ((0, 0), (0, dout_p - b.shape[-1])))
        padded.append((wp, bp))
    return padded


# ---------------------------------------------------------------------------
# Forward passes.
# ---------------------------------------------------------------------------
def mlp_forward(padded_params, x, out_dim, *, tb=256, matmul_dtype=jnp.float32):
    """One MlpNet tower; padded_params must come from pad_mlp_params."""
    b_true, d_in = x.shape
    n = len(padded_params)
    din_p = padded_params[0][0].shape[0]

    tb = min(_round_up(max(tb, SUBLANE), SUBLANE), _round_up(b_true, SUBLANE))
    bp = _round_up(b_true, tb)
    # Pad the activation once: rows to a tile multiple, features to 128 lanes.
    x = jnp.pad(x.astype(matmul_dtype), ((0, bp - b_true), (0, din_p - d_in)))

    stats = None
    for li, (w, b) in enumerate(padded_params):
        if li < n - 1:
            x, stats = _hidden_layer_call(x, stats, w, b, tb=tb, b_true=b_true,
                                          matmul_dtype=matmul_dtype)
        else:
            x = _final_layer_call(x, stats, w, b, tb=tb, b_true=b_true,
                                  matmul_dtype=matmul_dtype)
    return x[:b_true, :out_dim]


def deep_cca_forward(padded_params1, padded_params2, x1, x2, *,
                     out_dim1, out_dim2, tb=256, matmul_dtype=jnp.float32):
    """DeepCCA.forward: (model1(x1), model2(x2))."""
    o1 = mlp_forward(padded_params1, x1, out_dim1, tb=tb, matmul_dtype=matmul_dtype)
    o2 = mlp_forward(padded_params2, x2, out_dim2, tb=tb, matmul_dtype=matmul_dtype)
    return o1, o2


# ---------------------------------------------------------------------------
# Parameter construction (deterministic, mimics torch.nn.Linear init bounds).
# ---------------------------------------------------------------------------
def init_mlp_params(key, layer_sizes, input_size):
    sizes = [input_size] + list(layer_sizes)
    params = []
    for i in range(len(sizes) - 1):
        key, kw, kb = jax.random.split(key, 3)
        bound = 1.0 / float(sizes[i]) ** 0.5
        w = jax.random.uniform(kw, (sizes[i], sizes[i + 1]), jnp.float32, -bound, bound)
        b = jax.random.uniform(kb, (1, sizes[i + 1]), jnp.float32, -bound, bound)
        params.append((w, b))
    return params, key


# ---------------------------------------------------------------------------
# Pure-JAX reference (torch layer order, f32, HIGHEST-precision dots).
# ---------------------------------------------------------------------------
def _mlp_reference(params, x):
    n = len(params)
    x = x.astype(jnp.float32)
    hi = lax.Precision.HIGHEST
    for i, (w, b) in enumerate(params):
        if i == n - 1:
            mean = jnp.mean(x, axis=0, keepdims=True)
            var = jnp.maximum(jnp.mean(x * x, axis=0, keepdims=True) - mean * mean, 0.0)
            xn = (x - mean) * lax.rsqrt(var + BN_EPS)
            x = jnp.dot(xn, w, precision=hi) + b
        else:
            z = jnp.dot(x, w, precision=hi) + b
            s = 0.5 * (1.0 + jnp.tanh(0.5 * z))
            mean = jnp.mean(s, axis=0, keepdims=True)
            var = jnp.maximum(jnp.mean(s * s, axis=0, keepdims=True) - mean * mean, 0.0)
            x = (s - mean) * lax.rsqrt(var + BN_EPS)
    return x


# ---------------------------------------------------------------------------
if __name__ == "__main__":
    key = jax.random.PRNGKey(0)

    batch = 24                       # deliberately NOT a multiple of the tile
    input_size1, input_size2 = 32, 24
    outdim_size = 16
    layer_sizes1 = [64, 32, outdim_size]
    layer_sizes2 = [48, outdim_size]
    TB = 16                          # small tile so the demo exercises a 2-tile grid

    params1, key = init_mlp_params(key, layer_sizes1, input_size1)
    params2, key = init_mlp_params(key, layer_sizes2, input_size2)

    key, k1, k2 = jax.random.split(key, 3)
    x1 = jax.random.normal(k1, (batch, input_size1), jnp.float32)
    x2 = jax.random.normal(k2, (batch, input_size2), jnp.float32)

    # Parameters are padded/cast ONCE, outside the jitted forward.
    pp1_f32 = pad_mlp_params(params1, jnp.float32)
    pp2_f32 = pad_mlp_params(params2, jnp.float32)

    fwd = jax.jit(deep_cca_forward,
                  static_argnames=("out_dim1", "out_dim2", "tb", "matmul_dtype"))

    out1, out2 = fwd(pp1_f32, pp2_f32, x1, x2,
                     out_dim1=outdim_size, out_dim2=outdim_size,
                     tb=TB, matmul_dtype=jnp.float32)
    jax.block_until_ready((out1, out2))

    assert out1.shape == (batch, outdim_size)
    assert out2.shape == (batch, outdim_size)
    assert bool(jnp.all(jnp.isfinite(out1))) and bool(jnp.all(jnp.isfinite(out2)))

    # f32 path must match the pure-JAX reference tightly.
    ref1 = _mlp_reference(params1, x1)
    ref2 = _mlp_reference(params2, x2)
    assert jnp.allclose(out1, ref1, atol=1e-4, rtol=1e-4), \
        float(jnp.max(jnp.abs(out1 - ref1)))
    assert jnp.allclose(out2, ref2, atol=1e-4, rtol=1e-4), \
        float(jnp.max(jnp.abs(out2 - ref2)))

    # bf16 fast path (v6e/v7x MXU-native, BN statistics still f32):
    # loose sanity check against the f32 reference.
    pp1_bf16 = pad_mlp_params(params1, jnp.bfloat16)
    pp2_bf16 = pad_mlp_params(params2, jnp.bfloat16)
    o1b, o2b = fwd(pp1_bf16, pp2_bf16, x1, x2,
                   out_dim1=outdim_size, out_dim2=outdim_size,
                   tb=TB, matmul_dtype=jnp.bfloat16)
    jax.block_until_ready((o1b, o2b))
    assert bool(jnp.all(jnp.isfinite(o1b))) and bool(jnp.all(jnp.isfinite(o2b)))
    assert jnp.allclose(o1b, ref1, atol=0.15, rtol=0.15)
    assert jnp.allclose(o2b, ref2, atol=0.15, rtol=0.15)

    print("KERNEL_OK")
</pallas_src>

<mosaic_0001>
module attributes {stable_mosaic.version = 11 : i64} {
  func.func @kernel(%arg0: i32, %arg1: memref<16x128xf32, #tpu.memory_space<vmem>>, %arg2: memref<128x128xf32, #tpu.memory_space<vmem>>, %arg3: memref<1x128xf32, #tpu.memory_space<vmem>>, %arg4: memref<16x128xf32, #tpu.memory_space<vmem>>, %arg5: memref<2x128xf32, #tpu.memory_space<vmem>>, %arg6: memref<8x128xf32, #tpu.memory_space<vmem>>, %arg7: memref<8x128xf32, #tpu.memory_space<vmem>>) attributes {dimension_semantics = [#tpu.dimension_semantics<arbitrary>], iteration_bounds = array<i64: 2>, scalar_prefetch = 0 : i64, scratch_operands = 2 : i64, tpu.core_type = #tpu.core_type<tc>, window_params = [{transform_indices = @transform_0, window_bounds = array<i64: 16, 128>}, {pipeline_mode = #tpu.pipeline_mode<synchronous>, transform_indices = @transform_1, window_bounds = array<i64: 128, 128>}, {pipeline_mode = #tpu.pipeline_mode<synchronous>, transform_indices = @transform_2, window_bounds = array<i64: 1, 128>}, {transform_indices = @transform_3, window_bounds = array<i64: 16, 128>}, {pipeline_mode = #tpu.pipeline_mode<synchronous>, transform_indices = @transform_4, window_bounds = array<i64: 2, 128>}]} {
    %c0_i32 = arith.constant 0 : i32
    %0 = arith.cmpi eq, %arg0, %c0_i32 : i32
    %1 = arith.extui %0 : i1 to i32
    %c0_i32_0 = arith.constant 0 : i32
    %2 = arith.cmpi ne, %1, %c0_i32_0 : i32
    scf.if %2 {
      %cst_24 = arith.constant 0.000000e+00 : f32
      %40 = vector.broadcast %cst_24 : f32 to vector<8x128xf32>
      %c0_25 = arith.constant 0 : index
      %c0_26 = arith.constant 0 : index
      %41 = vector.load %arg6[%c0_25, %c0_26] : memref<8x128xf32, #tpu.memory_space<vmem>>, vector<8x128xf32>
      tpu.vector_store %arg6[%c0_25, %c0_26], %40 {strides = array<i32>} : memref<8x128xf32, #tpu.memory_space<vmem>>, vector<8x128xf32>,
      %cst_27 = arith.constant 0.000000e+00 : f32
      %42 = vector.broadcast %cst_27 : f32 to vector<8x128xf32>
      %c0_28 = arith.constant 0 : index
      %c0_29 = arith.constant 0 : index
      %43 = vector.load %arg7[%c0_28, %c0_29] : memref<8x128xf32, #tpu.memory_space<vmem>>, vector<8x128xf32>
      tpu.vector_store %arg7[%c0_28, %c0_29], %42 {strides = array<i32>} : memref<8x128xf32, #tpu.memory_space<vmem>>, vector<8x128xf32>,
    } else {
    }
    %c0 = arith.constant 0 : index
    %c0_1 = arith.constant 0 : index
    %3 = vector.load %arg1[%c0, %c0_1] : memref<16x128xf32, #tpu.memory_space<vmem>>, vector<16x128xf32>
    %c0_2 = arith.constant 0 : index
    %c0_3 = arith.constant 0 : index
    %4 = vector.load %arg2[%c0_2, %c0_3] : memref<128x128xf32, #tpu.memory_space<vmem>>, vector<128x128xf32>
    %cst = arith.constant dense<0.000000e+00> : vector<16x128xf32>
    %5 = tpu.matmul %3, %4, %cst {dimension_numbers = #tpu.dot_dimension_numbers<[1], [0], [0], [1], [0, 0, 1, 1], [], []>} : vector<16x128xf32>, vector<128x128xf32>, vector<16x128xf32> -> vector<16x128xf32>
    %c0_4 = arith.constant 0 : index
    %c0_5 = arith.constant 0 : index
    %6 = vector.load %arg3[%c0_4, %c0_5] : memref<1x128xf32, #tpu.memory_space<vmem>>, vector<1x128xf32>
    %7 = vector.broadcast %6 : vector<1x128xf32> to vector<16x128xf32>
    %8 = arith.addf %5, %7 : vector<16x128xf32>
    %cst_6 = arith.constant 5.000000e-01 : f32
    %9 = vector.broadcast %cst_6 : f32 to vector<16x128xf32>
    %10 = arith.mulf %9, %8 : vector<16x128xf32>
    %11 = math.tanh %10 : vector<16x128xf32>
    %cst_7 = arith.constant 1.000000e+00 : f32
    %12 = vector.broadcast %cst_7 : f32 to vector<16x128xf32>
    %13 = arith.addf %12, %11 : vector<16x128xf32>
    %cst_8 = arith.constant 5.000000e-01 : f32
    %14 = vector.broadcast %cst_8 : f32 to vector<16x128xf32>
    %15 = arith.mulf %14, %13 : vector<16x128xf32>
    %c0_9 = arith.constant 0 : index
    %c0_10 = arith.constant 0 : index
    %16 = vector.load %arg4[%c0_9, %c0_10] : memref<16x128xf32, #tpu.memory_space<vmem>>, vector<16x128xf32>
    tpu.vector_store %arg4[%c0_9, %c0_10], %15 {strides = array<i32>} : memref<16x128xf32, #tpu.memory_space<vmem>>, vector<16x128xf32>,
    %c16_i32 = arith.constant 16 : i32
    %17 = arith.muli %arg0, %c16_i32 : i32
    %18 = tpu.iota {dimensions = array<i32: 0>} : vector<16x1xi32>
    %19 = vector.broadcast %17 : i32 to vector<16x1xi32>
    %20 = arith.addi %19, %18 : vector<16x1xi32>
    %c24_i32 = arith.constant 24 : i32
    %21 = vector.broadcast %c24_i32 : i32 to vector<16x1xi32>
    %22 = arith.cmpi slt, %20, %21 : vector<16x1xi32>
    %cst_11 = arith.constant 0.000000e+00 : f32
    %23 = vector.shape_cast %22 : vector<16x1xi1> to vector<16x1xi1>
    %24 = vector.broadcast %23 : vector<16x1xi1> to vector<16x128xi1>
    %25 = vector.broadcast %cst_11 : f32 to vector<16x128xf32>
    %26 = arith.select %24, %15, %25 : vector<16x128xi1>, vector<16x128xf32>
    %cst_12 = arith.constant 1.000000e+00 : f32
    %27 = vector.broadcast %cst_12 : f32 to vector<8x16xf32>
    %c0_13 = arith.constant 0 : index
    %c0_14 = arith.constant 0 : index
    %28 = vector.load %arg6[%c0_13, %c0_14] : memref<8x128xf32, #tpu.memory_space<vmem>>, vector<8x128xf32>
    %cst_15 = arith.constant dense<0.000000e+00> : vector<8x128xf32>
    %29 = tpu.matmul %27, %26, %cst_15 {dimension_numbers = #tpu.dot_dimension_numbers<[1], [0], [0], [1], [0, 0, 1, 1], [], []>} : vector<8x16xf32>, vector<16x128xf32>, vector<8x128xf32> -> vector<8x128xf32>
    %30 = arith.addf %28, %29 : vector<8x128xf32>
    %c0_16 = arith.constant 0 : index
    %c0_17 = arith.constant 0 : index
    %31 = vector.load %arg6[%c0_16, %c0_17] : memref<8x128xf32, #tpu.memory_space<vmem>>, vector<8x128xf32>
    tpu.vector_store %arg6[%c0_16, %c0_17], %30 {strides = array<i32>} : memref<8x128xf32, #tpu.memory_space<vmem>>, vector<8x128xf32>,
    %c0_18 = arith.constant 0 : index
    %c0_19 = arith.constant 0 : index
    %32 = vector.load %arg7[%c0_18, %c0_19] : memref<8x128xf32, #tpu.memory_space<vmem>>, vector<8x128xf32>
    %33 = arith.mulf %26, %26 : vector<16x128xf32>
    %cst_20 = arith.constant dense<0.000000e+00> : vector<8x128xf32>
    %34 = tpu.matmul %27, %33, %cst_20 {dimension_numbers = #tpu.dot_dimension_numbers<[1], [0], [0], [1], [0, 0, 1, 1], [], []>} : vector<8x16xf32>, vector<16x128xf32>, vector<8x128xf32> -> vector<8x128xf32>
    %35 = arith.addf %32, %34 : vector<8x128xf32>
    %c0_21 = arith.constant 0 : index
    %c0_22 = arith.constant 0 : index
    %36 = vector.load %arg7[%c0_21, %c0_22] : memref<8x128xf32, #tpu.memory_space<vmem>>, vector<8x128xf32>
    tpu.vector_store %arg7[%c0_21, %c0_22], %35 {strides = array<i32>} : memref<8x128xf32, #tpu.memory_space<vmem>>, vector<8x128xf32>,
    %c1_i32 = arith.constant 1 : i32
    %37 = arith.cmpi eq, %arg0, %c1_i32 : i32
    %38 = arith.extui %37 : i1 to i32
    %c0_i32_23 = arith.constant 0 : i32
    %39 = arith.cmpi ne, %38, %c0_i32_23 : i32
    scf.if %39 {
      %c0_24 = arith.constant 0 : index
      %c0_25 = arith.constant 0 : index
      %40 = vector.load %arg6[%c0_24, %c0_25] : memref<8x128xf32, #tpu.memory_space<vmem>>, vector<1x128xf32>
      %cst_26 = arith.constant 0.0416666679 : f32
      %41 = vector.broadcast %cst_26 : f32 to vector<1x128xf32>
      %42 = arith.mulf %40, %41 : vector<1x128xf32>
      %c0_27 = arith.constant 0 : index
      %c0_28 = arith.constant 0 : index
      %43 = vector.load %arg7[%c0_27, %c0_28] : memref<8x128xf32, #tpu.memory_space<vmem>>, vector<1x128xf32>
      %cst_29 = arith.constant 0.0416666679 : f32
      %44 = vector.broadcast %cst_29 : f32 to vector<1x128xf32>
      %45 = arith.mulf %43, %44 : vector<1x128xf32>
      %46 = arith.mulf %42, %42 : vector<1x128xf32>
      %47 = arith.subf %45, %46 : vector<1x128xf32>
      %cst_30 = arith.constant 0.000000e+00 : f32
      %48 = vector.broadcast %cst_30 : f32 to vector<1x128xf32>
      %49 = arith.maximumf %47, %48 : vector<1x128xf32>
      %c0_31 = arith.constant 0 : index
      %c0_32 = arith.constant 0 : index
      %50 = vector.load %arg5[%c0_31, %c0_32] : memref<2x128xf32, #tpu.memory_space<vmem>>, vector<1x128xf32>
      tpu.vector_store %arg5[%c0_31, %c0_32], %42 {strides = array<i32>} : memref<2x128xf32, #tpu.memory_space<vmem>>, vector<1x128xf32>,
      %cst_33 = arith.constant 9.99999974E-6 : f32
      %51 = vector.broadcast %cst_33 : f32 to vector<1x128xf32>
      %52 = arith.addf %49, %51 : vector<1x128xf32>
      %53 = math.rsqrt %52 : vector<1x128xf32>
      %c1 = arith.constant 1 : index
      %c0_34 = arith.constant 0 : index
      %54 = vector.load %arg5[%c1, %c0_34] : memref<2x128xf32, #tpu.memory_space<vmem>>, vector<1x128xf32>
      tpu.vector_store %arg5[%c1, %c0_34], %53 {strides = array<i32>} : memref<2x128xf32, #tpu.memory_space<vmem>>, vector<1x128xf32>,
    } else {
    }
    return
  }
  func.func @transform_0(%arg0: i32) -> (i32, i32) {
    %c0_i32 = arith.constant 0 : i32
    %c0_i32_0 = arith.constant 0 : i32
    return %arg0, %c0_i32 : i32, i32
  }
  func.func @transform_1(%arg0: i32) -> (i32, i32) {
    %c0_i32 = arith.constant 0 : i32
    %c0_i32_0 = arith.constant 0 : i32
    %c0_i32_1 = arith.constant 0 : i32
    return %c0_i32, %c0_i32_0 : i32, i32
  }
  func.func @transform_2(%arg0: i32) -> (i32, i32) {
    %c0_i32 = arith.constant 0 : i32
    %c0_i32_0 = arith.constant 0 : i32
    %c0_i32_1 = arith.constant 0 : i32
    return %c0_i32, %c0_i32_0 : i32, i32
  }
  func.func @transform_3(%arg0: i32) -> (i32, i32) {
    %c0_i32 = arith.constant 0 : i32
    %c0_i32_0 = arith.constant 0 : i32
    return %arg0, %c0_i32 : i32, i32
  }
  func.func @transform_4(%arg0: i32) -> (i32, i32) {
    %c0_i32 = arith.constant 0 : i32
    %c0_i32_0 = arith.constant 0 : i32
    %c0_i32_1 = arith.constant 0 : i32
    return %c0_i32, %c0_i32_0 : i32, i32
  }
}

module attributes {stable_mosaic.version = 11 : i64} {
  func.func @kernel(%arg0: i32, %arg1: memref<16x128xf32, #tpu.memory_space<vmem>>, %arg2: memref<2x128xf32, #tpu.memory_space<vmem>>, %arg3: memref<128x128xf32, #tpu.memory_space<vmem>>, %arg4: memref<1x128xf32, #tpu.memory_space<vmem>>, %arg5: memref<16x128xf32, #tpu.memory_space<vmem>>, %arg6: memref<2x128xf32, #tpu.memory_space<vmem>>, %arg7: memref<8x128xf32, #tpu.memory_space<vmem>>, %arg8: memref<8x128xf32, #tpu.memory_space<vmem>>) attributes {dimension_semantics = [#tpu.dimension_semantics<arbitrary>], iteration_bounds = array<i64: 2>, scalar_prefetch = 0 : i64, scratch_operands = 2 : i64, tpu.core_type = #tpu.core_type<tc>, window_params = [{transform_indices = @transform_0, window_bounds = array<i64: 16, 128>}, {pipeline_mode = #tpu.pipeline_mode<synchronous>, transform_indices = @transform_1, window_bounds = array<i64: 2, 128>}, {pipeline_mode = #tpu.pipeline_mode<synchronous>, transform_indices = @transform_2, window_bounds = array<i64: 128, 128>}, {pipeline_mode = #tpu.pipeline_mode<synchronous>, transform_indices = @transform_3, window_bounds = array<i64: 1, 128>}, {transform_indices = @transform_4, window_bounds = array<i64: 16, 128>}, {pipeline_mode = #tpu.pipeline_mode<synchronous>, transform_indices = @transform_5, window_bounds = array<i64: 2, 128>}]} {
    %c0_i32 = arith.constant 0 : i32
    %0 = arith.cmpi eq, %arg0, %c0_i32 : i32
    %1 = arith.extui %0 : i1 to i32
    %c0_i32_0 = arith.constant 0 : i32
    %2 = arith.cmpi ne, %1, %c0_i32_0 : i32
    scf.if %2 {
      %cst_27 = arith.constant 0.000000e+00 : f32
      %46 = vector.broadcast %cst_27 : f32 to vector<8x128xf32>
      %c0_28 = arith.constant 0 : index
      %c0_29 = arith.constant 0 : index
      %47 = vector.load %arg7[%c0_28, %c0_29] : memref<8x128xf32, #tpu.memory_space<vmem>>, vector<8x128xf32>
      tpu.vector_store %arg7[%c0_28, %c0_29], %46 {strides = array<i32>} : memref<8x128xf32, #tpu.memory_space<vmem>>, vector<8x128xf32>,
      %cst_30 = arith.constant 0.000000e+00 : f32
      %48 = vector.broadcast %cst_30 : f32 to vector<8x128xf32>
      %c0_31 = arith.constant 0 : index
      %c0_32 = arith.constant 0 : index
      %49 = vector.load %arg8[%c0_31, %c0_32] : memref<8x128xf32, #tpu.memory_space<vmem>>, vector<8x128xf32>
      tpu.vector_store %arg8[%c0_31, %c0_32], %48 {strides = array<i32>} : memref<8x128xf32, #tpu.memory_space<vmem>>, vector<8x128xf32>,
    } else {
    }
    %c0 = arith.constant 0 : index
    %c0_1 = arith.constant 0 : index
    %3 = vector.load %arg1[%c0, %c0_1] : memref<16x128xf32, #tpu.memory_space<vmem>>, vector<16x128xf32>
    %c0_2 = arith.constant 0 : index
    %c0_3 = arith.constant 0 : index
    %4 = vector.load %arg2[%c0_2, %c0_3] : memref<2x128xf32, #tpu.memory_space<vmem>>, vector<1x128xf32>
    %5 = vector.broadcast %4 : vector<1x128xf32> to vector<16x128xf32>
    %6 = arith.subf %3, %5 : vector<16x128xf32>
    %c1 = arith.constant 1 : index
    %c0_4 = arith.constant 0 : index
    %7 = vector.load %arg2[%c1, %c0_4] : memref<2x128xf32, #tpu.memory_space<vmem>>, vector<1x128xf32>
    %8 = vector.broadcast %7 : vector<1x128xf32> to vector<16x128xf32>
    %9 = arith.mulf %6, %8 : vector<16x128xf32>
    %c0_5 = arith.constant 0 : index
    %c0_6 = arith.constant 0 : index
    %10 = vector.load %arg3[%c0_5, %c0_6] : memref<128x128xf32, #tpu.memory_space<vmem>>, vector<128x128xf32>
    %cst = arith.constant dense<0.000000e+00> : vector<16x128xf32>
    %11 = tpu.matmul %9, %10, %cst {dimension_numbers = #tpu.dot_dimension_numbers<[1], [0], [0], [1], [0, 0, 1, 1], [], []>} : vector<16x128xf32>, vector<128x128xf32>, vector<16x128xf32> -> vector<16x128xf32>
    %c0_7 = arith.constant 0 : index
    %c0_8 = arith.constant 0 : index
    %12 = vector.load %arg4[%c0_7, %c0_8] : memref<1x128xf32, #tpu.memory_space<vmem>>, vector<1x128xf32>
    %13 = vector.broadcast %12 : vector<1x128xf32> to vector<16x128xf32>
    %14 = arith.addf %11, %13 : vector<16x128xf32>
    %cst_9 = arith.constant 5.000000e-01 : f32
    %15 = vector.broadcast %cst_9 : f32 to vector<16x128xf32>
    %16 = arith.mulf %15, %14 : vector<16x128xf32>
    %17 = math.tanh %16 : vector<16x128xf32>
    %cst_10 = arith.constant 1.000000e+00 : f32
    %18 = vector.broadcast %cst_10 : f32 to vector<16x128xf32>
    %19 = arith.addf %18, %17 : vector<16x128xf32>
    %cst_11 = arith.constant 5.000000e-01 : f32
    %20 = vector.broadcast %cst_11 : f32 to vector<16x128xf32>
    %21 = arith.mulf %20, %19 : vector<16x128xf32>
    %c0_12 = arith.constant 0 : index
    %c0_13 = arith.constant 0 : index
    %22 = vector.load %arg5[%c0_12, %c0_13] : memref<16x128xf32, #tpu.memory_space<vmem>>, vector<16x128xf32>
    tpu.vector_store %arg5[%c0_12, %c0_13], %21 {strides = array<i32>} : memref<16x128xf32, #tpu.memory_space<vmem>>, vector<16x128xf32>,
    %c16_i32 = arith.constant 16 : i32
    %23 = arith.muli %arg0, %c16_i32 : i32
    %24 = tpu.iota {dimensions = array<i32: 0>} : vector<16x1xi32>
    %25 = vector.broadcast %23 : i32 to vector<16x1xi32>
    %26 = arith.addi %25, %24 : vector<16x1xi32>
    %c24_i32 = arith.constant 24 : i32
    %27 = vector.broadcast %c24_i32 : i32 to vector<16x1xi32>
    %28 = arith.cmpi slt, %26, %27 : vector<16x1xi32>
    %cst_14 = arith.constant 0.000000e+00 : f32
    %29 = vector.shape_cast %28 : vector<16x1xi1> to vector<16x1xi1>
    %30 = vector.broadcast %29 : vector<16x1xi1> to vector<16x128xi1>
    %31 = vector.broadcast %cst_14 : f32 to vector<16x128xf32>
    %32 = arith.select %30, %21, %31 : vector<16x128xi1>, vector<16x128xf32>
    %cst_15 = arith.constant 1.000000e+00 : f32
    %33 = vector.broadcast %cst_15 : f32 to vector<8x16xf32>
    %c0_16 = arith.constant 0 : index
    %c0_17 = arith.constant 0 : index
    %34 = vector.load %arg7[%c0_16, %c0_17] : memref<8x128xf32, #tpu.memory_space<vmem>>, vector<8x128xf32>
    %cst_18 = arith.constant dense<0.000000e+00> : vector<8x128xf32>
    %35 = tpu.matmul %33, %32, %cst_18 {dimension_numbers = #tpu.dot_dimension_numbers<[1], [0], [0], [1], [0, 0, 1, 1], [], []>} : vector<8x16xf32>, vector<16x128xf32>, vector<8x128xf32> -> vector<8x128xf32>
    %36 = arith.addf %34, %35 : vector<8x128xf32>
    %c0_19 = arith.constant 0 : index
    %c0_20 = arith.constant 0 : index
    %37 = vector.load %arg7[%c0_19, %c0_20] : memref<8x128xf32, #tpu.memory_space<vmem>>, vector<8x128xf32>
    tpu.vector_store %arg7[%c0_19, %c0_20], %36 {strides = array<i32>} : memref<8x128xf32, #tpu.memory_space<vmem>>, vector<8x128xf32>,
    %c0_21 = arith.constant 0 : index
    %c0_22 = arith.constant 0 : index
    %38 = vector.load %arg8[%c0_21, %c0_22] : memref<8x128xf32, #tpu.memory_space<vmem>>, vector<8x128xf32>
    %39 = arith.mulf %32, %32 : vector<16x128xf32>
    %cst_23 = arith.constant dense<0.000000e+00> : vector<8x128xf32>
    %40 = tpu.matmul %33, %39, %cst_23 {dimension_numbers = #tpu.dot_dimension_numbers<[1], [0], [0], [1], [0, 0, 1, 1], [], []>} : vector<8x16xf32>, vector<16x128xf32>, vector<8x128xf32> -> vector<8x128xf32>
    %41 = arith.addf %38, %40 : vector<8x128xf32>
    %c0_24 = arith.constant 0 : index
    %c0_25 = arith.constant 0 : index
    %42 = vector.load %arg8[%c0_24, %c0_25] : memref<8x128xf32, #tpu.memory_space<vmem>>, vector<8x128xf32>
    tpu.vector_store %arg8[%c0_24, %c0_25], %41 {strides = array<i32>} : memref<8x128xf32, #tpu.memory_space<vmem>>, vector<8x128xf32>,
    %c1_i32 = arith.constant 1 : i32
    %43 = arith.cmpi eq, %arg0, %c1_i32 : i32
    %44 = arith.extui %43 : i1 to i32
    %c0_i32_26 = arith.constant 0 : i32
    %45 = arith.cmpi ne, %44, %c0_i32_26 : i32
    scf.if %45 {
      %c0_27 = arith.constant 0 : index
      %c0_28 = arith.constant 0 : index
      %46 = vector.load %arg7[%c0_27, %c0_28] : memref<8x128xf32, #tpu.memory_space<vmem>>, vector<1x128xf32>
      %cst_29 = arith.constant 0.0416666679 : f32
      %47 = vector.broadcast %cst_29 : f32 to vector<1x128xf32>
      %48 = arith.mulf %46, %47 : vector<1x128xf32>
      %c0_30 = arith.constant 0 : index
      %c0_31 = arith.constant 0 : index
      %49 = vector.load %arg8[%c0_30, %c0_31] : memref<8x128xf32, #tpu.memory_space<vmem>>, vector<1x128xf32>
      %cst_32 = arith.constant 0.0416666679 : f32
      %50 = vector.broadcast %cst_32 : f32 to vector<1x128xf32>
      %51 = arith.mulf %49, %50 : vector<1x128xf32>
      %52 = arith.mulf %48, %48 : vector<1x128xf32>
      %53 = arith.subf %51, %52 : vector<1x128xf32>
      %cst_33 = arith.constant 0.000000e+00 : f32
      %54 = vector.broadcast %cst_33 : f32 to vector<1x128xf32>
      %55 = arith.maximumf %53, %54 : vector<1x128xf32>
      %c0_34 = arith.constant 0 : index
      %c0_35 = arith.constant 0 : index
      %56 = vector.load %arg6[%c0_34, %c0_35] : memref<2x128xf32, #tpu.memory_space<vmem>>, vector<1x128xf32>
      tpu.vector_store %arg6[%c0_34, %c0_35], %48 {strides = array<i32>} : memref<2x128xf32, #tpu.memory_space<vmem>>, vector<1x128xf32>,
      %cst_36 = arith.constant 9.99999974E-6 : f32
      %57 = vector.broadcast %cst_36 : f32 to vector<1x128xf32>
      %58 = arith.addf %55, %57 : vector<1x128xf32>
      %59 = math.rsqrt %58 : vector<1x128xf32>
      %c1_37 = arith.constant 1 : index
      %c0_38 = arith.constant 0 : index
      %60 = vector.load %arg6[%c1_37, %c0_38] : memref<2x128xf32, #tpu.memory_space<vmem>>, vector<1x128xf32>
      tpu.vector_store %arg6[%c1_37, %c0_38], %59 {strides = array<i32>} : memref<2x128xf32, #tpu.memory_space<vmem>>, vector<1x128xf32>,
    } else {
    }
    return
  }
  func.func @transform_0(%arg0: i32) -> (i32, i32) {
    %c0_i32 = arith.constant 0 : i32
    %c0_i32_0 = arith.constant 0 : i32
    return %arg0, %c0_i32 : i32, i32
  }
  func.func @transform_1(%arg0: i32) -> (i32, i32) {
    %c0_i32 = arith.constant 0 : i32
    %c0_i32_0 = arith.constant 0 : i32
    %c0_i32_1 = arith.constant 0 : i32
    return %c0_i32, %c0_i32_0 : i32, i32
  }
  func.func @transform_2(%arg0: i32) -> (i32, i32) {
    %c0_i32 = arith.constant 0 : i32
    %c0_i32_0 = arith.constant 0 : i32
    %c0_i32_1 = arith.constant 0 : i32
    return %c0_i32, %c0_i32_0 : i32, i32
  }
  func.func @transform_3(%arg0: i32) -> (i32, i32) {
    %c0_i32 = arith.constant 0 : i32
    %c0_i32_0 = arith.constant 0 : i32
    %c0_i32_1 = arith.constant 0 : i32
    return %c0_i32, %c0_i32_0 : i32, i32
  }
  func.func @transform_4(%arg0: i32) -> (i32, i32) {
    %c0_i32 = arith.constant 0 : i32
    %c0_i32_0 = arith.constant 0 : i32
    return %arg0, %c0_i32 : i32, i32
  }
  func.func @transform_5(%arg0: i32) -> (i32, i32) {
    %c0_i32 = arith.constant 0 : i32
    %c0_i32_0 = arith.constant 0 : i32
    %c0_i32_1 = arith.constant 0 : i32
    return %c0_i32, %c0_i32_0 : i32, i32
  }
}

module attributes {stable_mosaic.version = 11 : i64} {
  func.func @kernel(%arg0: i32, %arg1: i32, %arg2: memref<16x128xf32, #tpu.memory_space<vmem>>, %arg3: memref<2x128xf32, #tpu.memory_space<vmem>>, %arg4: memref<128x128xf32, #tpu.memory_space<vmem>>, %arg5: memref<1x128xf32, #tpu.memory_space<vmem>>, %arg6: memref<16x128xf32, #tpu.memory_space<vmem>>, %arg7: memref<8x128xf32, #tpu.memory_space<vmem>>, %arg8: memref<8x128xf32, #tpu.memory_space<vmem>>) attributes {dimension_semantics = [#tpu.dimension_semantics<arbitrary>, #tpu.dimension_semantics<arbitrary>], iteration_bounds = array<i64: 2, 2>, scalar_prefetch = 0 : i64, scratch_operands = 2 : i64, tpu.core_type = #tpu.core_type<tc>, window_params = [{transform_indices = @transform_0, window_bounds = array<i64: 16, 128>}, {pipeline_mode = #tpu.pipeline_mode<synchronous>, transform_indices = @transform_1, window_bounds = array<i64: 2, 128>}, {pipeline_mode = #tpu.pipeline_mode<synchronous>, transform_indices = @transform_2, window_bounds = array<i64: 128, 128>}, {pipeline_mode = #tpu.pipeline_mode<synchronous>, transform_indices = @transform_3, window_bounds = array<i64: 1, 128>}, {transform_indices = @transform_4, window_bounds = array<i64: 16, 128>}]} {
    %c0_i32 = arith.constant 0 : i32
    %0 = arith.cmpi eq, %arg0, %c0_i32 : i32
    %c0_i32_0 = arith.constant 0 : i32
    %1 = arith.cmpi eq, %arg1, %c0_i32_0 : i32
    %2 = arith.andi %0, %1 : i1
    %3 = arith.extui %2 : i1 to i32
    %c0_i32_1 = arith.constant 0 : i32
    %4 = arith.cmpi ne, %3, %c0_i32_1 : i32
    scf.if %4 {
      %cst_25 = arith.constant 0.000000e+00 : f32
      %54 = vector.broadcast %cst_25 : f32 to vector<8x128xf32>
      %c0_26 = arith.constant 0 : index
      %c0_27 = arith.constant 0 : index
      %55 = vector.load %arg7[%c0_26, %c0_27] : memref<8x128xf32, #tpu.memory_space<vmem>>, vector<8x128xf32>
      tpu.vector_store %arg7[%c0_26, %c0_27], %54 {strides = array<i32>} : memref<8x128xf32, #tpu.memory_space<vmem>>, vector<8x128xf32>,
      %cst_28 = arith.constant 0.000000e+00 : f32
      %56 = vector.broadcast %cst_28 : f32 to vector<8x128xf32>
      %c0_29 = arith.constant 0 : index
      %c0_30 = arith.constant 0 : index
      %57 = vector.load %arg8[%c0_29, %c0_30] : memref<8x128xf32, #tpu.memory_space<vmem>>, vector<8x128xf32>
      tpu.vector_store %arg8[%c0_29, %c0_30], %56 {strides = array<i32>} : memref<8x128xf32, #tpu.memory_space<vmem>>, vector<8x128xf32>,
    } else {
    }
    %c0 = arith.constant 0 : index
    %c0_2 = arith.constant 0 : index
    %5 = vector.load %arg2[%c0, %c0_2] : memref<16x128xf32, #tpu.memory_space<vmem>>, vector<16x128xf32>
    %c0_3 = arith.constant 0 : index
    %c0_4 = arith.constant 0 : index
    %6 = vector.load %arg3[%c0_3, %c0_4] : memref<2x128xf32, #tpu.memory_space<vmem>>, vector<1x128xf32>
    %7 = vector.broadcast %6 : vector<1x128xf32> to vector<16x128xf32>
    %8 = arith.subf %5, %7 : vector<16x128xf32>
    %c1 = arith.constant 1 : index
    %c0_5 = arith.constant 0 : index
    %9 = vector.load %arg3[%c1, %c0_5] : memref<2x128xf32, #tpu.memory_space<vmem>>, vector<1x128xf32>
    %10 = vector.broadcast %9 : vector<1x128xf32> to vector<16x128xf32>
    %11 = arith.mulf %8, %10 : vector<16x128xf32>
    %c16_i32 = arith.constant 16 : i32
    %12 = arith.muli %arg1, %c16_i32 : i32
    %13 = tpu.iota {dimensions = array<i32: 0>} : vector<16x1xi32>
    %14 = vector.broadcast %12 : i32 to vector<16x1xi32>
    %15 = arith.addi %14, %13 : vector<16x1xi32>
    %c24_i32 = arith.constant 24 : i32
    %16 = vector.broadcast %c24_i32 : i32 to vector<16x1xi32>
    %17 = arith.cmpi slt, %15, %16 : vector<16x1xi32>
    %cst = arith.constant 0.000000e+00 : f32
    %18 = vector.shape_cast %17 : vector<16x1xi1> to vector<16x1xi1>
    %19 = vector.broadcast %18 : vector<16x1xi1> to vector<16x128xi1>
    %20 = vector.broadcast %cst : f32 to vector<16x128xf32>
    %21 = arith.select %19, %11, %20 : vector<16x128xi1>, vector<16x128xf32>
    %cst_6 = arith.constant 1.000000e+00 : f32
    %22 = vector.broadcast %cst_6 : f32 to vector<8x16xf32>
    %cst_7 = arith.constant dense<0.000000e+00> : vector<8x128xf32>
    %23 = tpu.matmul %22, %21, %cst_7 {dimension_numbers = #tpu.dot_dimension_numbers<[1], [0], [0], [1], [0, 0, 1, 1], [], []>} : vector<8x16xf32>, vector<16x128xf32>, vector<8x128xf32> -> vector<8x128xf32>
    %24 = arith.mulf %21, %21 : vector<16x128xf32>
    %cst_8 = arith.constant dense<0.000000e+00> : vector<8x128xf32>
    %25 = tpu.matmul %22, %24, %cst_8 {dimension_numbers = #tpu.dot_dimension_numbers<[1], [0], [0], [1], [0, 0, 1, 1], [], []>} : vector<8x16xf32>, vector<16x128xf32>, vector<8x128xf32> -> vector<8x128xf32>
    %c0_i32_9 = arith.constant 0 : i32
    %26 = arith.cmpi eq, %arg0, %c0_i32_9 : i32
    %27 = arith.extui %26 : i1 to i32
    %c0_i32_10 = arith.constant 0 : i32
    %28 = arith.cmpi ne, %27, %c0_i32_10 : i32
    scf.if %28 {
      %c0_25 = arith.constant 0 : index
      %c0_26 = arith.constant 0 : index
      %54 = vector.load %arg7[%c0_25, %c0_26] : memref<8x128xf32, #tpu.memory_space<vmem>>, vector<8x128xf32>
      %55 = arith.addf %54, %23 : vector<8x128xf32>
      %c0_27 = arith.constant 0 : index
      %c0_28 = arith.constant 0 : index
      %56 = vector.load %arg7[%c0_27, %c0_28] : memref<8x128xf32, #tpu.memory_space<vmem>>, vector<8x128xf32>
      tpu.vector_store %arg7[%c0_27, %c0_28], %55 {strides = array<i32>} : memref<8x128xf32, #tpu.memory_space<vmem>>, vector<8x128xf32>,
      %c0_29 = arith.constant 0 : index
      %c0_30 = arith.constant 0 : index
      %57 = vector.load %arg8[%c0_29, %c0_30] : memref<8x128xf32, #tpu.memory_space<vmem>>, vector<8x128xf32>
      %58 = arith.addf %57, %25 : vector<8x128xf32>
      %c0_31 = arith.constant 0 : index
      %c0_32 = arith.constant 0 : index
      %59 = vector.load %arg8[%c0_31, %c0_32] : memref<8x128xf32, #tpu.memory_space<vmem>>, vector<8x128xf32>
      tpu.vector_store %arg8[%c0_31, %c0_32], %58 {strides = array<i32>} : memref<8x128xf32, #tpu.memory_space<vmem>>, vector<8x128xf32>,
    } else {
    }
    %c0_11 = arith.constant 0 : index
    %c0_12 = arith.constant 0 : index
    %29 = vector.load %arg7[%c0_11, %c0_12] : memref<8x128xf32, #tpu.memory_space<vmem>>, vector<1x128xf32>
    %cst_13 = arith.constant 0.0416666679 : f32
    %30 = vector.broadcast %cst_13 : f32 to vector<1x128xf32>
    %31 = arith.mulf %29, %30 : vector<1x128xf32>
    %c0_14 = arith.constant 0 : index
    %c0_15 = arith.constant 0 : index
    %32 = vector.load %arg8[%c0_14, %c0_15] : memref<8x128xf32, #tpu.memory_space<vmem>>, vector<1x128xf32>
    %cst_16 = arith.constant 0.0416666679 : f32
    %33 = vector.broadcast %cst_16 : f32 to vector<1x128xf32>
    %34 = arith.mulf %32, %33 : vector<1x128xf32>
    %35 = arith.mulf %31, %31 : vector<1x128xf32>
    %36 = arith.subf %34, %35 : vector<1x128xf32>
    %cst_17 = arith.constant 0.000000e+00 : f32
    %37 = vector.broadcast %cst_17 : f32 to vector<1x128xf32>
    %38 = arith.maximumf %36, %37 : vector<1x128xf32>
    %39 = vector.broadcast %31 : vector<1x128xf32> to vector<16x128xf32>
    %40 = arith.subf %11, %39 : vector<16x128xf32>
    %cst_18 = arith.constant 9.99999974E-6 : f32
    %41 = vector.broadcast %cst_18 : f32 to vector<1x128xf32>
    %42 = arith.addf %38, %41 : vector<1x128xf32>
    %43 = math.rsqrt %42 : vector<1x128xf32>
    %44 = vector.broadcast %43 : vector<1x128xf32> to vector<16x128xf32>
    %45 = arith.mulf %40, %44 : vector<16x128xf32>
    %c0_19 = arith.constant 0 : index
    %c0_20 = arith.constant 0 : index
    %46 = vector.load %arg4[%c0_19, %c0_20] : memref<128x128xf32, #tpu.memory_space<vmem>>, vector<128x128xf32>
    %cst_21 = arith.constant dense<0.000000e+00> : vector<16x128xf32>
    %47 = tpu.matmul %45, %46, %cst_21 {dimension_numbers = #tpu.dot_dimension_numbers<[1], [0], [0], [1], [0, 0, 1, 1], [], []>} : vector<16x128xf32>, vector<128x128xf32>, vector<16x128xf32> -> vector<16x128xf32>
    %c0_22 = arith.constant 0 : index
    %c0_23 = arith.constant 0 : index
    %48 = vector.load %arg5[%c0_22, %c0_23] : memref<1x128xf32, #tpu.memory_space<vmem>>, vector<1x128xf32>
    %49 = vector.broadcast %48 : vector<1x128xf32> to vector<16x128xf32>
    %50 = arith.addf %47, %49 : vector<16x128xf32>
    %c1_i32 = arith.constant 1 : i32
    %51 = arith.cmpi eq, %arg0, %c1_i32 : i32
    %52 = arith.extui %51 : i1 to i32
    %c0_i32_24 = arith.constant 0 : i32
    %53 = arith.cmpi ne, %52, %c0_i32_24 : i32
    scf.if %53 {
      %c0_25 = arith.constant 0 : index
      %c0_26 = arith.constant 0 : index
      %54 = vector.load %arg6[%c0_25, %c0_26] : memref<16x128xf32, #tpu.memory_space<vmem>>, vector<16x128xf32>
      tpu.vector_store %arg6[%c0_25, %c0_26], %50 {strides = array<i32>} : memref<16x128xf32, #tpu.memory_space<vmem>>, vector<16x128xf32>,
    } else {
    }
    return
  }
  func.func @transform_0(%arg0: i32, %arg1: i32) -> (i32, i32) {
    %c0_i32 = arith.constant 0 : i32
    %c0_i32_0 = arith.constant 0 : i32
    return %arg1, %c0_i32 : i32, i32
  }
  func.func @transform_1(%arg0: i32, %arg1: i32) -> (i32, i32) {
    %c0_i32 = arith.constant 0 : i32
    %c0_i32_0 = arith.constant 0 : i32
    %c0_i32_1 = arith.constant 0 : i32
    return %c0_i32, %c0_i32_0 : i32, i32
  }
  func.func @transform_2(%arg0: i32, %arg1: i32) -> (i32, i32) {
    %c0_i32 = arith.constant 0 : i32
    %c0_i32_0 = arith.constant 0 : i32
    %c0_i32_1 = arith.constant 0 : i32
    return %c0_i32, %c0_i32_0 : i32, i32
  }
  func.func @transform_3(%arg0: i32, %arg1: i32) -> (i32, i32) {
    %c0_i32 = arith.constant 0 : i32
    %c0_i32_0 = arith.constant 0 : i32
    %c0_i32_1 = arith.constant 0 : i32
    return %c0_i32, %c0_i32_0 : i32, i32
  }
  func.func @transform_4(%arg0: i32, %arg1: i32) -> (i32, i32) {
    %c0_i32 = arith.constant 0 : i32
    %c0_i32_0 = arith.constant 0 : i32
    return %arg1, %c0_i32 : i32, i32
  }
}

module attributes {stable_mosaic.version = 11 : i64} {
  func.func @kernel(%arg0: i32, %arg1: memref<16x128xf32, #tpu.memory_space<vmem>>, %arg2: memref<128x128xf32, #tpu.memory_space<vmem>>, %arg3: memref<1x128xf32, #tpu.memory_space<vmem>>, %arg4: memref<16x128xf32, #tpu.memory_space<vmem>>, %arg5: memref<2x128xf32, #tpu.memory_space<vmem>>, %arg6: memref<8x128xf32, #tpu.memory_space<vmem>>, %arg7: memref<8x128xf32, #tpu.memory_space<vmem>>) attributes {dimension_semantics = [#tpu.dimension_semantics<arbitrary>], iteration_bounds = array<i64: 2>, scalar_prefetch = 0 : i64, scratch_operands = 2 : i64, tpu.core_type = #tpu.core_type<tc>, window_params = [{transform_indices = @transform_0, window_bounds = array<i64: 16, 128>}, {pipeline_mode = #tpu.pipeline_mode<synchronous>, transform_indices = @transform_1, window_bounds = array<i64: 128, 128>}, {pipeline_mode = #tpu.pipeline_mode<synchronous>, transform_indices = @transform_2, window_bounds = array<i64: 1, 128>}, {transform_indices = @transform_3, window_bounds = array<i64: 16, 128>}, {pipeline_mode = #tpu.pipeline_mode<synchronous>, transform_indices = @transform_4, window_bounds = array<i64: 2, 128>}]} {
    %c0_i32 = arith.constant 0 : i32
    %0 = arith.cmpi eq, %arg0, %c0_i32 : i32
    %1 = arith.extui %0 : i1 to i32
    %c0_i32_0 = arith.constant 0 : i32
    %2 = arith.cmpi ne, %1, %c0_i32_0 : i32
    scf.if %2 {
      %cst_24 = arith.constant 0.000000e+00 : f32
      %40 = vector.broadcast %cst_24 : f32 to vector<8x128xf32>
      %c0_25 = arith.constant 0 : index
      %c0_26 = arith.constant 0 : index
      %41 = vector.load %arg6[%c0_25, %c0_26] : memref<8x128xf32, #tpu.memory_space<vmem>>, vector<8x128xf32>
      tpu.vector_store %arg6[%c0_25, %c0_26], %40 {strides = array<i32>} : memref<8x128xf32, #tpu.memory_space<vmem>>, vector<8x128xf32>,
      %cst_27 = arith.constant 0.000000e+00 : f32
      %42 = vector.broadcast %cst_27 : f32 to vector<8x128xf32>
      %c0_28 = arith.constant 0 : index
      %c0_29 = arith.constant 0 : index
      %43 = vector.load %arg7[%c0_28, %c0_29] : memref<8x128xf32, #tpu.memory_space<vmem>>, vector<8x128xf32>
      tpu.vector_store %arg7[%c0_28, %c0_29], %42 {strides = array<i32>} : memref<8x128xf32, #tpu.memory_space<vmem>>, vector<8x128xf32>,
    } else {
    }
    %c0 = arith.constant 0 : index
    %c0_1 = arith.constant 0 : index
    %3 = vector.load %arg1[%c0, %c0_1] : memref<16x128xf32, #tpu.memory_space<vmem>>, vector<16x128xf32>
    %c0_2 = arith.constant 0 : index
    %c0_3 = arith.constant 0 : index
    %4 = vector.load %arg2[%c0_2, %c0_3] : memref<128x128xf32, #tpu.memory_space<vmem>>, vector<128x128xf32>
    %cst = arith.constant dense<0.000000e+00> : vector<16x128xf32>
    %5 = tpu.matmul %3, %4, %cst {dimension_numbers = #tpu.dot_dimension_numbers<[1], [0], [0], [1], [0, 0, 1, 1], [], []>} : vector<16x128xf32>, vector<128x128xf32>, vector<16x128xf32> -> vector<16x128xf32>
    %c0_4 = arith.constant 0 : index
    %c0_5 = arith.constant 0 : index
    %6 = vector.load %arg3[%c0_4, %c0_5] : memref<1x128xf32, #tpu.memory_space<vmem>>, vector<1x128xf32>
    %7 = vector.broadcast %6 : vector<1x128xf32> to vector<16x128xf32>
    %8 = arith.addf %5, %7 : vector<16x128xf32>
    %cst_6 = arith.constant 5.000000e-01 : f32
    %9 = vector.broadcast %cst_6 : f32 to vector<16x128xf32>
    %10 = arith.mulf %9, %8 : vector<16x128xf32>
    %11 = math.tanh %10 : vector<16x128xf32>
    %cst_7 = arith.constant 1.000000e+00 : f32
    %12 = vector.broadcast %cst_7 : f32 to vector<16x128xf32>
    %13 = arith.addf %12, %11 : vector<16x128xf32>
    %cst_8 = arith.constant 5.000000e-01 : f32
    %14 = vector.broadcast %cst_8 : f32 to vector<16x128xf32>
    %15 = arith.mulf %14, %13 : vector<16x128xf32>
    %c0_9 = arith.constant 0 : index
    %c0_10 = arith.constant 0 : index
    %16 = vector.load %arg4[%c0_9, %c0_10] : memref<16x128xf32, #tpu.memory_space<vmem>>, vector<16x128xf32>
    tpu.vector_store %arg4[%c0_9, %c0_10], %15 {strides = array<i32>} : memref<16x128xf32, #tpu.memory_space<vmem>>, vector<16x128xf32>,
    %c16_i32 = arith.constant 16 : i32
    %17 = arith.muli %arg0, %c16_i32 : i32
    %18 = tpu.iota {dimensions = array<i32: 0>} : vector<16x1xi32>
    %19 = vector.broadcast %17 : i32 to vector<16x1xi32>
    %20 = arith.addi %19, %18 : vector<16x1xi32>
    %c24_i32 = arith.constant 24 : i32
    %21 = vector.broadcast %c24_i32 : i32 to vector<16x1xi32>
    %22 = arith.cmpi slt, %20, %21 : vector<16x1xi32>
    %cst_11 = arith.constant 0.000000e+00 : f32
    %23 = vector.shape_cast %22 : vector<16x1xi1> to vector<16x1xi1>
    %24 = vector.broadcast %23 : vector<16x1xi1> to vector<16x128xi1>
    %25 = vector.broadcast %cst_11 : f32 to vector<16x128xf32>
    %26 = arith.select %24, %15, %25 : vector<16x128xi1>, vector<16x128xf32>
    %cst_12 = arith.constant 1.000000e+00 : f32
    %27 = vector.broadcast %cst_12 : f32 to vector<8x16xf32>
    %c0_13 = arith.constant 0 : index
    %c0_14 = arith.constant 0 : index
    %28 = vector.load %arg6[%c0_13, %c0_14] : memref<8x128xf32, #tpu.memory_space<vmem>>, vector<8x128xf32>
    %cst_15 = arith.constant dense<0.000000e+00> : vector<8x128xf32>
    %29 = tpu.matmul %27, %26, %cst_15 {dimension_numbers = #tpu.dot_dimension_numbers<[1], [0], [0], [1], [0, 0, 1, 1], [], []>} : vector<8x16xf32>, vector<16x128xf32>, vector<8x128xf32> -> vector<8x128xf32>
    %30 = arith.addf %28, %29 : vector<8x128xf32>
    %c0_16 = arith.constant 0 : index
    %c0_17 = arith.constant 0 : index
    %31 = vector.load %arg6[%c0_16, %c0_17] : memref<8x128xf32, #tpu.memory_space<vmem>>, vector<8x128xf32>
    tpu.vector_store %arg6[%c0_16, %c0_17], %30 {strides = array<i32>} : memref<8x128xf32, #tpu.memory_space<vmem>>, vector<8x128xf32>,
    %c0_18 = arith.constant 0 : index
    %c0_19 = arith.constant 0 : index
    %32 = vector.load %arg7[%c0_18, %c0_19] : memref<8x128xf32, #tpu.memory_space<vmem>>, vector<8x128xf32>
    %33 = arith.mulf %26, %26 : vector<16x128xf32>
    %cst_20 = arith.constant dense<0.000000e+00> : vector<8x128xf32>
    %34 = tpu.matmul %27, %33, %cst_20 {dimension_numbers = #tpu.dot_dimension_numbers<[1], [0], [0], [1], [0, 0, 1, 1], [], []>} : vector<8x16xf32>, vector<16x128xf32>, vector<8x128xf32> -> vector<8x128xf32>
    %35 = arith.addf %32, %34 : vector<8x128xf32>
    %c0_21 = arith.constant 0 : index
    %c0_22 = arith.constant 0 : index
    %36 = vector.load %arg7[%c0_21, %c0_22] : memref<8x128xf32, #tpu.memory_space<vmem>>, vector<8x128xf32>
    tpu.vector_store %arg7[%c0_21, %c0_22], %35 {strides = array<i32>} : memref<8x128xf32, #tpu.memory_space<vmem>>, vector<8x128xf32>,
    %c1_i32 = arith.constant 1 : i32
    %37 = arith.cmpi eq, %arg0, %c1_i32 : i32
    %38 = arith.extui %37 : i1 to i32
    %c0_i32_23 = arith.constant 0 : i32
    %39 = arith.cmpi ne, %38, %c0_i32_23 : i32
    scf.if %39 {
      %c0_24 = arith.constant 0 : index
      %c0_25 = arith.constant 0 : index
      %40 = vector.load %arg6[%c0_24, %c0_25] : memref<8x128xf32, #tpu.memory_space<vmem>>, vector<1x128xf32>
      %cst_26 = arith.constant 0.0416666679 : f32
      %41 = vector.broadcast %cst_26 : f32 to vector<1x128xf32>
      %42 = arith.mulf %40, %41 : vector<1x128xf32>
      %c0_27 = arith.constant 0 : index
      %c0_28 = arith.constant 0 : index
      %43 = vector.load %arg7[%c0_27, %c0_28] : memref<8x128xf32, #tpu.memory_space<vmem>>, vector<1x128xf32>
      %cst_29 = arith.constant 0.0416666679 : f32
      %44 = vector.broadcast %cst_29 : f32 to vector<1x128xf32>
      %45 = arith.mulf %43, %44 : vector<1x128xf32>
      %46 = arith.mulf %42, %42 : vector<1x128xf32>
      %47 = arith.subf %45, %46 : vector<1x128xf32>
      %cst_30 = arith.constant 0.000000e+00 : f32
      %48 = vector.broadcast %cst_30 : f32 to vector<1x128xf32>
      %49 = arith.maximumf %47, %48 : vector<1x128xf32>
      %c0_31 = arith.constant 0 : index
      %c0_32 = arith.constant 0 : index
      %50 = vector.load %arg5[%c0_31, %c0_32] : memref<2x128xf32, #tpu.memory_space<vmem>>, vector<1x128xf32>
      tpu.vector_store %arg5[%c0_31, %c0_32], %42 {strides = array<i32>} : memref<2x128xf32, #tpu.memory_space<vmem>>, vector<1x128xf32>,
      %cst_33 = arith.constant 9.99999974E-6 : f32
      %51 = vector.broadcast %cst_33 : f32 to vector<1x128xf32>
      %52 = arith.addf %49, %51 : vector<1x128xf32>
      %53 = math.rsqrt %52 : vector<1x128xf32>
      %c1 = arith.constant 1 : index
      %c0_34 = arith.constant 0 : index
      %54 = vector.load %arg5[%c1, %c0_34] : memref<2x128xf32, #tpu.memory_space<vmem>>, vector<1x128xf32>
      tpu.vector_store %arg5[%c1, %c0_34], %53 {strides = array<i32>} : memref<2x128xf32, #tpu.memory_space<vmem>>, vector<1x128xf32>,
    } else {
    }
    return
  }
  func.func @transform_0(%arg0: i32) -> (i32, i32) {
    %c0_i32 = arith.constant 0 : i32
    %c0_i32_0 = arith.constant 0 : i32
    return %arg0, %c0_i32 : i32, i32
  }
  func.func @transform_1(%arg0: i32) -> (i32, i32) {
    %c0_i32 = arith.constant 0 : i32
    %c0_i32_0 = arith.constant 0 : i32
    %c0_i32_1 = arith.constant 0 : i32
    return %c0_i32, %c0_i32_0 : i32, i32
  }
  func.func @transform_2(%arg0: i32) -> (i32, i32) {
    %c0_i32 = arith.constant 0 : i32
    %c0_i32_0 = arith.constant 0 : i32
    %c0_i32_1 = arith.constant 0 : i32
    return %c0_i32, %c0_i32_0 : i32, i32
  }
  func.func @transform_3(%arg0: i32) -> (i32, i32) {
    %c0_i32 = arith.constant 0 : i32
    %c0_i32_0 = arith.constant 0 : i32
    return %arg0, %c0_i32 : i32, i32
  }
  func.func @transform_4(%arg0: i32) -> (i32, i32) {
    %c0_i32 = arith.constant 0 : i32
    %c0_i32_0 = arith.constant 0 : i32
    %c0_i32_1 = arith.constant 0 : i32
    return %c0_i32, %c0_i32_0 : i32, i32
  }
}

</mosaic_0001>

<bundles_post_ra>
// kernel: deep_cca_forward.7
= control target key start
LH: loop header
LB: loop body
LE: loop exit
PB: predicated region body
PF: predicated region fallthrough
CT: control target
= control target key end

     0   :  { %s850_s15 = smov 0   ;;  %s852_s16 = smov 0   ;;  %s989_s0 = inlined_call_operand.vmem [shape: f32[32,128], index: 0, kind: input, shape index: {}]   ;;  %s990_s1 = inlined_call_operand.vmem [shape: f32[2,128], index: 1, kind: input, shape index: {}]   ;;  %s991_s2 = inlined_call_operand.vmem [shape: f32[128,128], index: 2, kind: input, shape index: {}]   ;;  %s992_s3 = inlined_call_operand.vmem [shape: f32[1,128], index: 3, kind: input, shape index: {}]   ;;  %s993_s4 = inlined_call_operand.vmem [shape: f32[32,128], index: 4, kind: output, shape index: {}]  }
   0x1   :  { %s854_s17 = smov 0   ;;  %s856_s18 = smov 0  }
   0x2   :  { %s858_s19 = smov 0  }
   0x3 LB: > { %s23_s20 = sadd.s32 1, %s810_s17  ;;  %s26_s21 = sadd.s32 1, %s814_s18  ;;  %s818_s19 = sphi %s858_s19, %s14_s19   ;;  %s814_s18 = sphi %s856_s18, %s997_s18   ;;  %s810_s17 = sphi %s854_s17, %s996_s17   ;;  %s806_s16 = sphi %s852_s16, %s995_s16   ;;  %s802_s15 = sphi %s850_s15, %s994_s15  }
   0x4   : > { %p24_p0 = scmp.ge.s32.totalorder %s23_s20, 2  ;;  %p604_p1 = scmp.ge.s32.totalorder %s818_s19, 1 }
   0x5   : > { %p175_p2 = scmp.lt.s32.totalorder %s818_s19, 5 }
   0x6   : > { %s999_s20 = smov (%p24_p0, %s23_s20), 0  ;;  %s1001_s21 = smov (!%p24_p0, %s26_s21), %s814_s18 }
   0x7   : > { %p176_p3 = pnand %p604_p1, %p175_p2  ;;  %p28_p4 = scmp.ge.s32.totalorder %s1001_s21, 2 }
   0x8   : > { %s605_s22 = sshll.u32 (!%p176_p3), %s802_s15, 1  ;;  %p213_p5 = scmp.eq.s32.totalorder (!%p176_p3), %s806_s16, 0 }
   0x9   : > { %s1003_s21 = smov (%p28_p4, %s1001_s21), 0  ;;  %179 = sbr.rel (%p176_p3) target bundleno = 506 (0x1fa), region = 36 }
   0xa   : > { %p202_p6 = scmp.lt.s32.totalorder (!%p176_p3), %s605_s22, 3  ;;  %p214_p7 = scmp.eq.s32.totalorder (!%p176_p3), %s802_s15, 0 }
   0xc   : > { %p215_p8 = pnand (!%p176_p3), %p214_p7, %p213_p5 }
  0x10   : > { %s1005_s22 = smov (!%p202_p6, %s605_s22), 3  ;;  %218 = sbr.rel (%p215_p8) target bundleno = 23 (0x17), region = 40 }
  0x11   : > { %s606_s23 = sshll.u32 %s1005_s22, 3  ;;  %v820_v0 = vmov (!%p215_p8), 0.0  }
  0x12   : > { %s205_s26 = scalar_lea.vmem %s989_s0, %s606_s23  ;;  %s893_s29 = scalar_lea.vmem %s993_s4, %s606_s23  ;;  %219 = vst [vmem:[#allocation2] sm:$0xff] (!%p215_p8), %v820_v0  ;;  %220 = vst [vmem:[#allocation3] sm:$0xff] (!%p215_p8), %v820_v0 }
  0x17 PF: > { %v221_v1 = vld [vmem:[%s205_s26] sm:$0xff]  ;;  %v222_v2 = vld [vmem:[%s205_s26 + $0x8] sm:$0xff]  ;;  %s611_s6 = sshll.u32 %s802_s15, 4  ;;  %v238_v4 = vlaneseq  ;;  %v821_v5 = vmov 0.0|0.0   ;;  %vm822_vm0 = vmmov 0   ;;  %v823_v13 = vmov 0.0  }
  0x18   : > { %v609_v3 = vld [vmem:[%s990_s1] ss:$0 sm:$0xff]  ;;  %694 = vmatprep.subr.bf16.mxu1 %v821_v5  ;;  %v610_v8 = vld [vmem:[%s990_s1 + $0x1] ss:$0 sm:$0xff]  ;;  %v241_v9 = vstv %s611_s6  ;;  %649 = vmatprep.mubr.msk.f32.mxu1 %vm822_vm0, %v823_v13  ;;  %vm252_vm4 = vcmask 130048   ;;  %v824_v23 = vmov 1.0  }
  0x19   : > { %v228_v6 = vsub.f32 %v221_v1, %v609_v3  ;;  %v229_v7 = vsub.f32 %v222_v2, %v609_v3  ;;  %v902_v10 = vshrl.u32 %v238_v4, 7  ;;  %p616_p9 = scmp.ne.s32.totalorder %s806_s16, 0 }
  0x1a   : > { %v401_v28 = vld [vmem:[#allocation2] sm:$0xff] (!%p616_p9)  ;;  %v404_v29 = vld [vmem:[#allocation3] sm:$0xff] (!%p616_p9) }
  0x1b   : > { %v904_v11 = vmul.f32 %v610_v8, %v228_v6  ;;  %v906_v12 = vmul.f32 %v610_v8, %v229_v7  ;;  %v240_v14 = vadd.s32 8, %v902_v10  ;;  %v242_v15 = vadd.s32 %v241_v9, %v902_v10 }
  0x1d   : > { %v243_v16 = vadd.s32 %v241_v9, %v240_v14  ;;  %vm244_vm1 = vcmp.lt.s32.totalorder %v242_v15, 24  ;;  %v695_v17 = vpack.c.bf16 %v906_v12, %v904_v11 }
  0x1e   : > { %v250_v18 = vsel %vm244_vm1, %v904_v11, 0.0 }
  0x1f   : > { %vm245_vm2 = vcmp.lt.s32.totalorder %v243_v16, 24  ;;  %v326_v19 = vmul.f32 %v250_v18, %v250_v18 }
  0x20   : > { %v251_v20 = vsel %vm245_vm2, %v906_v12, 0.0  ;;  %vm696_vm3 = vmpackc.low %vm245_vm2, %vm244_vm1 }
  0x21   : > { %697 = vmatpush3.bf16.msk.msra.mxu1 %vm696_vm3, %v695_v17  ;;  %v327_v21 = vmul.f32 %v251_v20, %v251_v20 }
  0x22   : > { %698 = vmatprep.subr.bf16.mxu1 %v821_v5 }
  0x23   : > { %v699_v22 = vpack.c.bf16 %v327_v21, %v326_v19 }
  0x24   : > { %650 = vmatmul.mubr.msk.f32.vlgmr.msra.gmra.mrb[0].mxu1 %vm252_vm4, %v824_v23 }
  0x25   : > { %700 = vmatpush3.bf16.msra.mxu1 %v699_v22  ;;  %656 = vmatprep.mubr.msk.f32.mxu1 %vm822_vm0, %v823_v13 }
  0x28   : > { %657 = vmatmul.mubr.msk.f32.vlgmr.msra.gmra.mrb[2].mxu1 %vm252_vm4, %v824_v23 }
  0xf6   : > { %400 = sbr.rel (%p616_p9) target bundleno = 255 (0xff), region = 44 }
  0xf7   : > { %v322_v24 = vpop.f32.mrb[0].mxu1 }
  0xf8   : > { %v651_v25 = vpop.f32.mrb[1].mxu1  ;;  %v402_v30 = vadd.f32 (!%p616_p9), %v401_v28, %v322_v24 }
  0xfa   : > { %403 = vst [vmem:[#allocation2] sm:$0xff] (!%p616_p9), %v402_v30 }
  0xfb   : > { %v394_v26 = vpop.f32.mrb[2].mxu1 }
  0xfc   : > { %v658_v27 = vpop.f32.mrb[3].mxu1  ;;  %v405_v31 = vadd.f32 (!%p616_p9), %v404_v29, %v394_v26 }
  0xfe   : > { %406 = vst [vmem:[#allocation3] sm:$0xff] %v405_v31 }
  0xff PF: > { %v428_v32 = vld [vmem:[%s991_s2] sm:$0xff]  ;;  %v429_v33 = vld [vmem:[%s991_s2 + $0x8] sm:$0xff]  ;;  %v430_v34 = vld [vmem:[%s991_s2 + $0x10] sm:$0xff]  ;;  %v416_v58 = vsub.s32 0, %v902_v10  ;;  %p618_p10 = scmp.ne.s32.totalorder %s806_s16, 1 }
 0x100   : > { %v701_v35 = vpack.c.bf16 %v429_v33, %v428_v32  ;;  %v431_v36 = vld [vmem:[%s991_s2 + $0x18] sm:$0xff]  ;;  %v432_v38 = vld [vmem:[%s991_s2 + $0x20] sm:$0xff]  ;;  %v433_v39 = vld [vmem:[%s991_s2 + $0x28] sm:$0xff] }
 0x101   : > { %v705_v37 = vpack.c.bf16 %v431_v36, %v430_v34  ;;  %v709_v40 = vpack.c.bf16 %v433_v39, %v432_v38  ;;  %v434_v43 = vld [vmem:[%s991_s2 + $0x30] sm:$0xff]  ;;  %v435_v44 = vld [vmem:[%s991_s2 + $0x38] sm:$0xff]  ;;  %v436_v49 = vld [vmem:[%s991_s2 + $0x40] sm:$0xff] }
 0x102   : > { %702 = vmatprep.subr.bf16.mxu0 %v701_v35  ;;  %v713_v48 = vpack.c.bf16 %v435_v44, %v434_v43  ;;  %v437_v50 = vld [vmem:[%s991_s2 + $0x48] sm:$0xff]  ;;  %v438_v54 = vld [vmem:[%s991_s2 + $0x50] sm:$0xff]  ;;  %v439_v55 = vld [vmem:[%s991_s2 + $0x58] sm:$0xff] }
 0x103   : > { %704 = vmatpush3.bf16.msra.mxu0 %v701_v35  ;;  %v407_v41 = vld [vmem:[#allocation2] sm:$0x1]  ;;  %v717_v53 = vpack.c.bf16 %v437_v50, %v436_v49  ;;  %v721_v57 = vpack.c.bf16 %v439_v55, %v438_v54  ;;  %v441_v60 = vld [vmem:[%s991_s2 + $0x68] sm:$0xff]  ;;  %v442_v63 = vld [vmem:[%s991_s2 + $0x70] sm:$0xff] }
 0x104   : > { %706 = vmatprep.subr.bf16.mxu0 %v705_v37  ;;  %v408_v45 = vmul.f32 0.041666668, %v407_v41  ;;  %v440_v59 = vld [vmem:[%s991_s2 + $0x60] sm:$0xff]  ;;  %v443_v0 = vld [vmem:[%s991_s2 + $0x78] sm:$0xff] }
 0x105   : > { %v409_v42 = vld [vmem:[#allocation3] sm:$0x1]  ;;  %v725_v61 = vpack.c.bf16 %v441_v60, %v440_v59  ;;  %v729_v1 = vpack.c.bf16 %v443_v0, %v442_v63  ;;  %v617_v8 = vld [vmem:[%s992_s3] ss:$0 sm:$0xff] }
 0x106   : > { %v410_v46 = vmul.f32 0.041666668, %v409_v42  ;;  %v411_v47 = vmul.f32 %v408_v45, %v408_v45  ;;  %v417_v62 = vrot.slane %v408_v45, %v416_v58 }
 0x107   : > { %708 = vmatpush3.bf16.msra.mxu0 %v705_v37 }
 0x108   : > { %710 = vmatprep.subr.bf16.mxu0 %v709_v40  ;;  %v412_v51 = vsub.f32 %v410_v46, %v411_v47  ;;  %v418_v2 = vsub.f32 %v904_v11, %v417_v62  ;;  %v419_v5 = vsub.f32 %v906_v12, %v417_v62 }
 0x10a   : > { %v413_v52 = vmax.f32 %v412_v51, 0.0 }
 0x10b   : > { %712 = vmatpush3.bf16.msra.mxu0 %v709_v40 }
 0x10c   : > { %714 = vmatprep.subr.bf16.mxu0 %v713_v48  ;;  %v420_v56 = vadd.f32 1e-05, %v413_v52 }
 0x10e   : > { %778 = vrsqrt.f32 %v420_v56 }
 0x10f   : > { %716 = vmatpush3.bf16.msra.mxu0 %v713_v48 }
 0x110   : > { %718 = vmatprep.subr.bf16.mxu0 %v717_v53 }
 0x113   : > { %720 = vmatpush3.bf16.msra.mxu0 %v717_v53 }
 0x114   : > { %722 = vmatprep.subr.bf16.mxu0 %v721_v57 }
 0x117   : > { %724 = vmatpush3.bf16.msra.mxu0 %v721_v57 }
 0x118   : > { %726 = vmatprep.subr.bf16.mxu0 %v725_v61  ;;  %v779_v3 = vpop.eup %778 }
 0x119   : > { %v425_v4 = vrot.slane %v779_v3, %v416_v58 }
 0x11b   : > { %728 = vmatpush3.bf16.msra.mxu0 %v725_v61  ;;  %v426_v6 = vmul.f32 %v425_v4, %v418_v2  ;;  %v427_v7 = vmul.f32 %v425_v4, %v419_v5 }
 0x11c   : > { %730 = vmatprep.subr.bf16.mxu0 %v729_v1 }
 0x11d   : > { %691 = vmatprep.mubr.f32.mxu0 %v426_v6 }
 0x11f   : > { %732 = vmatpush3.bf16.msra.mxu0 %v729_v1 }
 0x122   : > { %692 = vmatmul.mubr.f32.vlgmr.msra.gmra.mrb[0].mxu0 %v427_v7 }
 0x1f1   : > { %529 = sbr.rel (%p618_p10) target bundleno = 506 (0x1fa), region = 48 }
 0x1f5   : > { %v693_v9 = vpop.f32.mrb[0].mxu0 }
 0x1f6   : > { %v523_v10 = vadd.f32 %v693_v9, %v617_v8  ;;  %v517_v13 = vpop.f32.mrb[1].mxu0 }
 0x1f7   : > { %v518_v14 = vadd.f32 %v617_v8, %v517_v13 }
 0x1f8   : > { %531 = vst [vmem:[%s893_s29 + $0x8] sm:$0xff] %v523_v10 }
 0x1f9   : > { %530 = vst [vmem:[%s893_s29] sm:$0xff] %v518_v14 }
 0x1fa PF: > { %s14_s19 = sadd.s32 1, %s818_s19   ;;  %s994_s15 = smov %s810_s17 }
 0x1fb   : > { %p11_p11 = scmp.ge.s32.totalorder %s14_s19, 6   ;;  %s995_s16 = smov %s814_s18 }
 0x1fc   : > { %s996_s17 = smov %s999_s20  ;;  %s997_s18 = smov %s1003_s21 }
 0x1fd   :  { %13 = sbr.rel (!%p11_p11) target bundleno = 3 (0x3), region = 78 }

// kernel: deep_cca_forward.5
= control target key start
LH: loop header
LB: loop body
LE: loop exit
PB: predicated region body
PF: predicated region fallthrough
CT: control target
= control target key end

     0   :  { %10 = vsyncpa [#allocation5], 0  ;;  %s1006_s0 = inlined_call_operand.vmem [shape: f32[32,128], index: 0, kind: input, shape index: {}]   ;;  %s1007_s1 = inlined_call_operand.hbm [shape: f32[128,128], index: 1, kind: input, shape index: {}]   ;;  %s1008_s2 = inlined_call_operand.hbm [shape: f32[1,128], index: 2, kind: input, shape index: {}]   ;;  %s1009_s3 = inlined_call_operand.vmem [shape: f32[32,128], index: 3, kind: output, shape index: {0}]   ;;  %s1010_s4 = inlined_call_operand.vmem [shape: f32[2,128], index: 4, kind: output, shape index: {1}]  }
   0x1   :  { %11 = vsyncpa [#allocation7], 0  ;;  %s892_s15 = smov 0  }
   0x2 LB: > { %s898_s16 = sadd.s32 4294967295, %s856_s15   ;;  %p611_p0 = scmp.ge.s32.totalorder %s856_s15, 1  ;;  %s856_s15 = sphi %s892_s15, %s17_s15  }
   0x3   : > { %p137_p1 = scmp.lt.s32.totalorder %s856_s15, 3  ;;  %s858_s17 = smov [#allocation4]  }
   0x4   : > { %s149_s18 = sshll.u32 %s858_s17, 4  ;;  %p1011_p4 = scmp.eq.s32.totalorder %s898_s16, 0  ;;  %s150_s18 = int_to_ptr.vmem [resolvable:$true] %s149_s18 }
   0x5   : > { %p903_p3 = pnand %p611_p0, %p137_p1  ;;  %s859_s20 = smov [#allocation6]  }
   0x6   : > { %s163_s21 = sshll.u32 %s859_s20, 4  ;;  %s786_s25 = scalar_lea.hbm %s1007_s1, 2048  ;;  %s916_s21 = int_to_ptr.vmem [resolvable:$true] %s163_s21 }
   0x7   : > { %s1013_s19 = scalar_select %p903_p3, 1, 0 }
   0x8   : > { %p752_p5 = pneg %p903_p3  ;;  %p787_p7 = scmp.ne.s32.totalorder %s1007_s1, %s786_s25 }
   0x9   : > { %p793_p11 = scmp.lt.u32.totalorder %s786_s25, %s1007_s1 }
   0xa   : > { %p912_p6 = pnand %p1011_p4, %p752_p5 }
   0xc   : > { %p788_p8 = pneg %p912_p6 }
   0xe   : > { %p789_p9 = pnand %p788_p8, %p787_p7 }
  0x10   : > { %p790_p10 = pneg %p789_p9 }
  0x12   : > { %p795_p12 = pnand %p793_p11, %p790_p10 }
  0x14   : > { %798 = shalt.err (!%p795_p12)
}
  0x15   : > { %s799_s30 = scalar_lea.vmem %s150_s18, 2048  ;;  %p807_p5 = scmp.lt.s32.totalorder %s150_s18, %s150_s18 }
  0x16   : > { %p800_p13 = scmp.ne.s32.totalorder %s150_s18, %s799_s30  ;;  %p808_p2 = scmp.lt.s32.totalorder %s799_s30, %s799_s30 }
  0x18   : > { %p802_p0 = pnand %p800_p13, %p788_p8  ;;  %p809_p4 = por %p808_p2, %p807_p5 }
  0x1a   : > { %p803_p1 = pneg %p802_p0 }
  0x1c   : > { %p810_p3 = pnand %p809_p4, %p803_p1 }
  0x1e   : > { %813 = shalt.err (!%p810_p3)
}
  0x1f   : > { %s860_s5 = smov 128   ;;  %s861_s6 = smov 8  }
  0x20   : > { %755 = dma.hbm_to_vmem [thread:$0]  (!%p912_p6), %s1007_s1, 2048, %s150_s18, [#allocation5], %s860_s5, %s860_s5, %s861_s6  }
  0x21   : > { %s814_s11 = scalar_lea.hbm %s1008_s2, 16 }
  0x22   : > { %p815_p7 = scmp.ne.s32.totalorder %s1008_s2, %s814_s11  ;;  %p821_p4 = scmp.lt.u32.totalorder %s814_s11, %s1008_s2 }
  0x24   : > { %p817_p2 = pnand %p815_p7, %p788_p8 }
  0x26   : > { %p818_p3 = pneg %p817_p2 }
  0x28   : > { %p823_p9 = pnand %p821_p4, %p818_p3 }
  0x2a   : > { %826 = shalt.err (!%p823_p9)
}
  0x2b   : > { %s827_s18 = scalar_lea.vmem %s916_s21, 16  ;;  %s834_s20 = scalar_lea.vmem %s916_s21, 32 }
  0x2c   : > { %p828_p10 = scmp.ne.s32.totalorder %s916_s21, %s827_s18  ;;  %p835_p13 = scmp.lt.s32.totalorder %s916_s21, %s916_s21 }
  0x2d   : > { %p836_p0 = scmp.lt.s32.totalorder %s834_s20, %s827_s18 }
  0x2e   : > { %p830_p11 = pnand %p828_p10, %p788_p8 }
  0x2f   : > { %p837_p1 = por %p836_p0, %p835_p13 }
  0x30   : > { %p831_p12 = pneg %p830_p11 }
  0x32   : > { %p838_p5 = pnand %p837_p1, %p831_p12 }
  0x34   : > { %841 = shalt.err (!%p838_p5)
}
  0x35   : > { %758 = dma.hbm_to_vmem [thread:$0]  (!%p912_p6), %s1008_s2, 16, %s916_s21, [#allocation7]  }
  0x36   : > { %p1015_p7 = scmp.ne.s32.totalorder %s1013_s19, 0 }
  0x37   : > { %p1016_p8 = scmp.eq.s32.totalorder (!%p1015_p7), %s898_s16, 0 }
  0x38   : > { %185 = sbr.rel (%p1015_p7) target bundleno = 595 (0x253), region = 32 }
  0x3f   : > { %847 = dma.done.wait (%p1016_p8), [#allocation5], 2048   ;;  %p1017_p2 = pmov %p1016_p8 }
  0x41   : > { %849 = vsyncadd (%p1017_p2), [#allocation5], 4294965248  ;;  %p1018_p3 = pmov %p1017_p2 }
  0x42   : > { %p1019_p4 = pmov %p1017_p2 }
  0x43   : > { %851 = dma.done.wait (%p1018_p3), [#allocation7], 16  }
  0x44   : > { %853 = vsyncadd (%p1019_p4), [#allocation7], 4294967280  ;;  %s618_s22 = sshll.u32 %s898_s16, 1  ;;  %p1020_p6 = scmp.ne.s32.totalorder %s898_s16, 0 }
  0x45   : > { %p216_p9 = scmp.lt.s32.totalorder %s618_s22, 3  ;;  %v862_v0 = vmov (!%p1020_p6), 0.0  }
  0x46   : > { %230 = sbr.rel (%p1020_p6) target bundleno = 77 (0x4d), region = 44  ;;  %231 = vst [vmem:[#allocation2] sm:$0xff] (!%p1020_p6), %v862_v0  ;;  %232 = vst [vmem:[#allocation3] sm:$0xff] (!%p1020_p6), %v862_v0 }
  0x47   : > { %s1022_s22 = smov (!%p216_p9, %s618_s22), 3 }
  0x48   : > { %s619_s21 = sshll.u32 %s1022_s22, 3 }
  0x49   : > { %s980_s26 = scalar_lea.vmem %s1006_s0, %s619_s21  ;;  %s985_s29 = scalar_lea.vmem %s1009_s3, %s619_s21 }
  0x4d PF: > { %v235_v1 = vld [vmem:[#allocation4] sm:$0xff]  ;;  %v236_v2 = vld [vmem:[#allocation4 + $0x8] sm:$0xff]  ;;  %v237_v3 = vld [vmem:[#allocation4 + $0x10] sm:$0xff]  ;;  %v863_v27 = vmov 0.0|0.0   ;;  %vm864_vm0 = vmmov 0   ;;  %v865_v28 = vmov 0.0   ;;  %v344_v33 = vlaneseq }
  0x4e   : > { %v705_v4 = vpack.c.bf16 %v236_v2, %v235_v1  ;;  %v238_v5 = vld [vmem:[#allocation4 + $0x18] sm:$0xff]  ;;  %v239_v7 = vld [vmem:[#allocation4 + $0x20] sm:$0xff]  ;;  %v240_v8 = vld [vmem:[#allocation4 + $0x28] sm:$0xff]  ;;  %737 = vmatprep.subr.bf16.mxu1 %v863_v27  ;;  %695 = vmatprep.mubr.msk.f32.mxu1 %vm864_vm0, %v865_v28  ;;  %s624_s30 = sshll.u32 %s898_s16, 4  ;;  %vm359_vm4 = vcmask 130048   ;;  %v866_v54 = vmov 1.0  }
  0x4f   : > { %v709_v6 = vpack.c.bf16 %v238_v5, %v237_v3  ;;  %v713_v9 = vpack.c.bf16 %v240_v8, %v239_v7  ;;  %v233_v10 = vld [vmem:[%s980_s26] sm:$0xff]  ;;  %v242_v12 = vld [vmem:[#allocation4 + $0x38] sm:$0xff]  ;;  %v243_v14 = vld [vmem:[#allocation4 + $0x40] sm:$0xff]  ;;  %v345_v37 = vshrl.u32 %v344_v33, 7  ;;  %v347_v39 = vstv %s624_s30  ;;  %p629_p10 = scmp.ne.s32.totalorder %s898_s16, 1 }
  0x50   : > { %706 = vmatprep.subr.bf16.mxu0 %v705_v4  ;;  %v241_v11 = vld [vmem:[#allocation4 + $0x30] sm:$0xff]  ;;  %688 = vmatprep.mubr.f32.mxu0 %v233_v10  ;;  %v244_v15 = vld [vmem:[#allocation4 + $0x48] sm:$0xff]  ;;  %v246_v18 = vld [vmem:[#allocation4 + $0x58] sm:$0xff] }
  0x51   : > { %708 = vmatpush3.bf16.msra.mxu0 %v705_v4  ;;  %v717_v13 = vpack.c.bf16 %v242_v12, %v241_v11  ;;  %v721_v16 = vpack.c.bf16 %v244_v15, %v243_v14  ;;  %v245_v17 = vld [vmem:[#allocation4 + $0x50] sm:$0xff]  ;;  %v247_v20 = vld [vmem:[#allocation4 + $0x60] sm:$0xff]  ;;  %v248_v21 = vld [vmem:[#allocation4 + $0x68] sm:$0xff]  ;;  %v346_v38 = vadd.s32 8, %v345_v37  ;;  %v348_v40 = vadd.s32 %v347_v39, %v345_v37 }
  0x52   : > { %710 = vmatprep.subr.bf16.mxu0 %v709_v6  ;;  %v725_v19 = vpack.c.bf16 %v246_v18, %v245_v17  ;;  %v729_v22 = vpack.c.bf16 %v248_v21, %v247_v20  ;;  %v249_v23 = vld [vmem:[#allocation4 + $0x70] sm:$0xff]  ;;  %v250_v24 = vld [vmem:[#allocation4 + $0x78] sm:$0xff]  ;;  %v623_v29 = vld [vmem:[#allocation6] ss:$0 sm:$0xff] }
  0x53   : > { %v733_v25 = vpack.c.bf16 %v250_v24, %v249_v23  ;;  %v234_v26 = vld [vmem:[%s980_s26 + $0x8] sm:$0xff]  ;;  %v349_v41 = vadd.s32 %v347_v39, %v346_v38  ;;  %vm350_vm1 = vcmp.lt.s32.totalorder %v348_v40, 24  ;;  %v358_v55 = vld [vmem:[#allocation2] sm:$0xff] }
  0x54   : > { %v435_v59 = vld [vmem:[#allocation3] sm:$0xff] }
  0x55   : > { %712 = vmatpush3.bf16.msra.mxu0 %v709_v6  ;;  %vm351_vm2 = vcmp.lt.s32.totalorder %v349_v41, 24 }
  0x56   : > { %714 = vmatprep.subr.bf16.mxu0 %v713_v9  ;;  %vm739_vm3 = vmpackc.low %vm351_vm2, %vm350_vm1 }
  0x59   : > { %716 = vmatpush3.bf16.msra.mxu0 %v713_v9 }
  0x5a   : > { %718 = vmatprep.subr.bf16.mxu0 %v717_v13 }
  0x5d   : > { %720 = vmatpush3.bf16.msra.mxu0 %v717_v13 }
  0x5e   : > { %722 = vmatprep.subr.bf16.mxu0 %v721_v16 }
  0x61   : > { %724 = vmatpush3.bf16.msra.mxu0 %v721_v16 }
  0x62   : > { %726 = vmatprep.subr.bf16.mxu0 %v725_v19 }
  0x65   : > { %728 = vmatpush3.bf16.msra.mxu0 %v725_v19 }
  0x66   : > { %730 = vmatprep.subr.bf16.mxu0 %v729_v22 }
  0x69   : > { %732 = vmatpush3.bf16.msra.mxu0 %v729_v22 }
  0x6a   : > { %734 = vmatprep.subr.bf16.mxu0 %v733_v25 }
  0x6d   : > { %736 = vmatpush3.bf16.msra.mxu0 %v733_v25 }
  0x70   : > { %689 = vmatmul.mubr.f32.vlgmr.msra.gmra.mrb[0].mxu0 %v234_v26 }
 0x143   : > { %v690_v30 = vpop.f32.mrb[0].mxu0 }
 0x144   : > { %v330_v31 = vadd.f32 %v690_v30, %v623_v29  ;;  %v324_v32 = vpop.f32.mrb[1].mxu0 }
 0x145   : > { %v325_v34 = vadd.f32 %v623_v29, %v324_v32 }
 0x146   : > { %v334_v35 = vmul.f32 0.5, %v330_v31 }
 0x147   : > { %v333_v36 = vmul.f32 0.5, %v325_v34 }
 0x148   : > { %780 = vtanh.f32 %v334_v35 }
 0x149   : > { %782 = vtanh.f32 %v333_v36 }
 0x152   : > { %v781_v42 = vpop.eup %780 }
 0x153   : > { %v783_v43 = vpop.eup %782  ;;  %v338_v44 = vadd.f32 1.0, %v781_v42 }
 0x154   : > { %v337_v45 = vadd.f32 1.0, %v783_v43 }
 0x155   : > { %v340_v46 = vmul.f32 0.5, %v338_v44 }
 0x156   : > { %v339_v47 = vmul.f32 0.5, %v337_v45 }
 0x157   : > { %v357_v48 = vsel %vm351_vm2, %v340_v46, 0.0  ;;  %342 = vst [vmem:[%s985_s29 + $0x8] sm:$0xff] %v340_v46 }
 0x158   : > { %341 = vst [vmem:[%s985_s29] sm:$0xff] %v339_v47  ;;  %v356_v49 = vsel %vm350_vm1, %v339_v47, 0.0  ;;  %v738_v50 = vpack.c.bf16 %v340_v46, %v339_v47  ;;  %v437_v51 = vmul.f32 %v357_v48, %v357_v48 }
 0x159   : > { %v436_v52 = vmul.f32 %v356_v49, %v356_v49 }
 0x15a   : > { %740 = vmatpush3.bf16.msk.msra.mxu1 %vm739_vm3, %v738_v50 }
 0x15b   : > { %v742_v53 = vpack.c.bf16 %v437_v51, %v436_v52  ;;  %741 = vmatprep.subr.bf16.mxu1 %v863_v27 }
 0x15d   : > { %696 = vmatmul.mubr.msk.f32.vlgmr.msra.gmra.mrb[0].mxu1 %vm359_vm4, %v866_v54 }
 0x15e   : > { %743 = vmatpush3.bf16.msra.mxu1 %v742_v53  ;;  %702 = vmatprep.mubr.msk.f32.mxu1 %vm864_vm0, %v865_v28 }
 0x161   : > { %703 = vmatmul.mubr.msk.f32.vlgmr.msra.gmra.mrb[2].mxu1 %vm359_vm4, %v866_v54 }
 0x230   : > { %v429_v56 = vpop.f32.mrb[0].mxu1 }
 0x231   : > { %v433_v57 = vadd.f32 %v429_v56, %v358_v55  ;;  %v697_v58 = vpop.f32.mrb[1].mxu1  ;;  %513 = sbr.rel (%p629_p10) target bundleno = 595 (0x253), region = 48 }
 0x233   : > { %434 = vst [vmem:[#allocation2] sm:$0xff] %v433_v57 }
 0x234   : > { %v504_v60 = vpop.f32.mrb[2].mxu1 }
 0x235   : > { %v508_v61 = vadd.f32 %v504_v60, %v435_v59  ;;  %v704_v62 = vpop.f32.mrb[3].mxu1 }
 0x237   : > { %509 = vst [vmem:[#allocation3] sm:$0xff] %v508_v61 }
 0x23a   : > { %v514_v63 = vld [vmem:[#allocation2] sm:$0x1] }
 0x23b   : > { %v515_v1 = vmul.f32 0.041666668, %v514_v63 }
 0x23d   : > { %v518_v3 = vmul.f32 %v515_v1, %v515_v1  ;;  %521 = vst [vmem:[%s1010_s4] sm:$0x1] %v515_v1 }
 0x23e   : > { %v516_v0 = vld [vmem:[#allocation3] sm:$0x1] }
 0x23f   : > { %v517_v2 = vmul.f32 0.041666668, %v516_v0 }
 0x241   : > { %v519_v4 = vsub.f32 %v517_v2, %v518_v3 }
 0x243   : > { %v520_v5 = vmax.f32 %v519_v4, 0.0 }
 0x245   : > { %v522_v6 = vadd.f32 1e-05, %v520_v5 }
 0x247   : > { %784 = vrsqrt.f32 %v522_v6 }
 0x251   : > { %v785_v7 = vpop.eup %784 }
 0x252   : > { %524 = vst [vmem:[%s1010_s4 + $0x1] sm:$0x1] %v785_v7 }
 0x253 PF: > { %s17_s15 = sadd.s32 1, %s856_s15  }
 0x254   : > { %p14_p11 = scmp.ge.s32.totalorder %s17_s15, 4  }
 0x256   :  { %16 = sbr.rel (!%p14_p11) target bundleno = 2 (0x2), region = 87 }
 0x25d   :  { %553 = vsyncpa [#allocation5], 1 }
 0x25e   :  { %555 = vsyncpa [#allocation5 + $0x1], 1 }
 0x25f   :  { %556 = vsyncpa [#allocation7], 1 }

// kernel: deep_cca_forward.6
= control target key start
LH: loop header
LB: loop body
LE: loop exit
PB: predicated region body
PF: predicated region fallthrough
CT: control target
= control target key end

     0   :  { %s795_s18 = smov 0   ;;  %s891_s0 = inlined_call_operand.vmem [shape: f32[32,128], index: 0, kind: input, shape index: {}]   ;;  %s892_s1 = inlined_call_operand.vmem [shape: f32[2,128], index: 1, kind: input, shape index: {}]   ;;  %s893_s2 = inlined_call_operand.vmem [shape: f32[128,128], index: 2, kind: input, shape index: {}]   ;;  %s894_s3 = inlined_call_operand.vmem [shape: f32[1,128], index: 3, kind: input, shape index: {}]   ;;  %s895_s4 = inlined_call_operand.vmem [shape: f32[32,128], index: 4, kind: output, shape index: {0}]   ;;  %s896_s5 = inlined_call_operand.vmem [shape: f32[2,128], index: 5, kind: output, shape index: {1}]  }
   0x1 LB: > { %s801_s19 = sadd.s32 4294967295, %s758_s18   ;;  %p604_p0 = scmp.ge.s32.totalorder %s758_s18, 1  ;;  %s758_s18 = sphi %s795_s18, %s16_s18  }
   0x2   : > { %p186_p1 = scmp.lt.s32.totalorder %s758_s18, 3 }
   0x4   : > { %p187_p2 = pnand %p604_p0, %p186_p1 }
   0x5   : > { %s605_s20 = sshll.u32 (!%p187_p2), %s801_s19, 1  ;;  %p609_p4 = scmp.ne.s32.totalorder (!%p187_p2), %s801_s19, 0 }
   0x6   : > { %190 = sbr.rel (%p187_p2) target bundleno = 538 (0x21a), region = 36  ;;  %p215_p3 = scmp.lt.s32.totalorder (!%p187_p2), %s605_s20, 3 }
   0xd   : > { %s898_s20 = smov (!%p215_p3, %s605_s20), 3  ;;  %229 = sbr.rel (%p609_p4) target bundleno = 20 (0x14), region = 40 }
   0xe   : > { %s606_s21 = sshll.u32 %s898_s20, 3  ;;  %v760_v0 = vmov (!%p609_p4), 0.0  }
   0xf   : > { %s809_s24 = scalar_lea.vmem %s891_s0, %s606_s21  ;;  %s814_s27 = scalar_lea.vmem %s895_s4, %s606_s21  ;;  %230 = vst [vmem:[#allocation2] sm:$0xff] (!%p609_p4), %v760_v0  ;;  %231 = vst [vmem:[#allocation3] sm:$0xff] (!%p609_p4), %v760_v0 }
  0x14 PF: > { %v248_v1 = vld [vmem:[%s893_s2] sm:$0xff]  ;;  %v249_v2 = vld [vmem:[%s893_s2 + $0x8] sm:$0xff]  ;;  %v250_v3 = vld [vmem:[%s893_s2 + $0x10] sm:$0xff]  ;;  %v761_v33 = vmov 0.0|0.0   ;;  %vm762_vm0 = vmmov 0   ;;  %v763_v34 = vmov 0.0   ;;  %v357_v39 = vlaneseq }
  0x15   : > { %v694_v4 = vpack.c.bf16 %v249_v2, %v248_v1  ;;  %v251_v5 = vld [vmem:[%s893_s2 + $0x18] sm:$0xff]  ;;  %v252_v7 = vld [vmem:[%s893_s2 + $0x20] sm:$0xff]  ;;  %v253_v8 = vld [vmem:[%s893_s2 + $0x28] sm:$0xff]  ;;  %726 = vmatprep.subr.bf16.mxu1 %v761_v33  ;;  %684 = vmatprep.mubr.msk.f32.mxu1 %vm762_vm0, %v763_v34  ;;  %vm372_vm4 = vcmask 130048   ;;  %v764_v60 = vmov 1.0   ;;  %p618_p5 = scmp.ne.s32.totalorder %s801_s19, 1 }
  0x16   : > { %v698_v6 = vpack.c.bf16 %v251_v5, %v250_v3  ;;  %v702_v9 = vpack.c.bf16 %v253_v8, %v252_v7  ;;  %v254_v10 = vld [vmem:[%s893_s2 + $0x30] sm:$0xff]  ;;  %v232_v11 = vld [vmem:[%s809_s24] sm:$0xff]  ;;  %v255_v12 = vld [vmem:[%s893_s2 + $0x38] sm:$0xff]  ;;  %v358_v43 = vshrl.u32 %v357_v39, 7 }
  0x17   : > { %695 = vmatprep.subr.bf16.mxu0 %v694_v4  ;;  %v610_v13 = vld [vmem:[%s892_s1] ss:$0 sm:$0xff]  ;;  %v611_v14 = vld [vmem:[%s892_s1 + $0x1] ss:$0 sm:$0xff]  ;;  %v706_v16 = vpack.c.bf16 %v255_v12, %v254_v10  ;;  %v257_v19 = vld [vmem:[%s893_s2 + $0x48] sm:$0xff] }
  0x18   : > { %697 = vmatpush3.bf16.msra.mxu0 %v694_v4  ;;  %v239_v15 = vsub.f32 %v232_v11, %v610_v13  ;;  %v256_v18 = vld [vmem:[%s893_s2 + $0x40] sm:$0xff]  ;;  %v258_v21 = vld [vmem:[%s893_s2 + $0x50] sm:$0xff]  ;;  %v259_v22 = vld [vmem:[%s893_s2 + $0x58] sm:$0xff]  ;;  %v359_v44 = vadd.s32 8, %v358_v43 }
  0x19   : > { %699 = vmatprep.subr.bf16.mxu0 %v698_v6  ;;  %v710_v20 = vpack.c.bf16 %v257_v19, %v256_v18  ;;  %v714_v23 = vpack.c.bf16 %v259_v22, %v258_v21  ;;  %v260_v24 = vld [vmem:[%s893_s2 + $0x60] sm:$0xff]  ;;  %v261_v25 = vld [vmem:[%s893_s2 + $0x68] sm:$0xff]  ;;  %v262_v27 = vld [vmem:[%s893_s2 + $0x70] sm:$0xff] }
  0x1a   : > { %v246_v17 = vmul.f32 %v611_v14, %v239_v15  ;;  %v718_v26 = vpack.c.bf16 %v261_v25, %v260_v24  ;;  %v263_v28 = vld [vmem:[%s893_s2 + $0x78] sm:$0xff]  ;;  %v233_v29 = vld [vmem:[%s809_s24 + $0x8] sm:$0xff]  ;;  %v612_v35 = vld [vmem:[%s894_s3] ss:$0 sm:$0xff]  ;;  %s613_s24 = sshll.u32 %s801_s19, 4 }
  0x1b   : > { %v722_v30 = vpack.c.bf16 %v263_v28, %v262_v27  ;;  %v240_v31 = vsub.f32 %v233_v29, %v610_v13  ;;  %v360_v45 = vstv %s613_s24  ;;  %v371_v61 = vld [vmem:[#allocation2] sm:$0xff]  ;;  %v448_v1 = vld [vmem:[#allocation3] sm:$0xff] }
  0x1c   : > { %701 = vmatpush3.bf16.msra.mxu0 %v698_v6  ;;  %677 = vmatprep.mubr.f32.mxu0 %v246_v17  ;;  %v361_v46 = vadd.s32 %v360_v45, %v358_v43  ;;  %v362_v47 = vadd.s32 %v360_v45, %v359_v44 }
  0x1d   : > { %703 = vmatprep.subr.bf16.mxu0 %v702_v9  ;;  %v247_v32 = vmul.f32 %v611_v14, %v240_v31 }
  0x1e   : > { %vm363_vm1 = vcmp.lt.s32.totalorder %v361_v46, 24  ;;  %vm364_vm2 = vcmp.lt.s32.totalorder %v362_v47, 24 }
  0x1f   : > { %vm728_vm3 = vmpackc.low %vm364_vm2, %vm363_vm1 }
  0x20   : > { %705 = vmatpush3.bf16.msra.mxu0 %v702_v9 }
  0x21   : > { %707 = vmatprep.subr.bf16.mxu0 %v706_v16 }
  0x24   : > { %709 = vmatpush3.bf16.msra.mxu0 %v706_v16 }
  0x25   : > { %711 = vmatprep.subr.bf16.mxu0 %v710_v20 }
  0x28   : > { %713 = vmatpush3.bf16.msra.mxu0 %v710_v20 }
  0x29   : > { %715 = vmatprep.subr.bf16.mxu0 %v714_v23 }
  0x2c   : > { %717 = vmatpush3.bf16.msra.mxu0 %v714_v23 }
  0x2d   : > { %719 = vmatprep.subr.bf16.mxu0 %v718_v26 }
  0x30   : > { %721 = vmatpush3.bf16.msra.mxu0 %v718_v26 }
  0x31   : > { %723 = vmatprep.subr.bf16.mxu0 %v722_v30 }
  0x34   : > { %725 = vmatpush3.bf16.msra.mxu0 %v722_v30 }
  0x37   : > { %678 = vmatmul.mubr.f32.vlgmr.msra.gmra.mrb[0].mxu0 %v247_v32 }
 0x10a   : > { %v679_v36 = vpop.f32.mrb[0].mxu0 }
 0x10b   : > { %v343_v37 = vadd.f32 %v679_v36, %v612_v35  ;;  %v337_v38 = vpop.f32.mrb[1].mxu0 }
 0x10c   : > { %v338_v40 = vadd.f32 %v612_v35, %v337_v38 }
 0x10d   : > { %v347_v41 = vmul.f32 0.5, %v343_v37 }
 0x10e   : > { %v346_v42 = vmul.f32 0.5, %v338_v40 }
 0x10f   : > { %746 = vtanh.f32 %v347_v41 }
 0x110   : > { %748 = vtanh.f32 %v346_v42 }
 0x119   : > { %v747_v48 = vpop.eup %746 }
 0x11a   : > { %v749_v49 = vpop.eup %748  ;;  %v351_v50 = vadd.f32 1.0, %v747_v48 }
 0x11b   : > { %v350_v51 = vadd.f32 1.0, %v749_v49 }
 0x11c   : > { %v353_v52 = vmul.f32 0.5, %v351_v50 }
 0x11d   : > { %v352_v53 = vmul.f32 0.5, %v350_v51 }
 0x11e   : > { %v370_v54 = vsel %vm364_vm2, %v353_v52, 0.0  ;;  %355 = vst [vmem:[%s814_s27 + $0x8] sm:$0xff] %v353_v52 }
 0x11f   : > { %354 = vst [vmem:[%s814_s27] sm:$0xff] %v352_v53  ;;  %v369_v55 = vsel %vm363_vm1, %v352_v53, 0.0  ;;  %v727_v56 = vpack.c.bf16 %v353_v52, %v352_v53  ;;  %v450_v57 = vmul.f32 %v370_v54, %v370_v54 }
 0x120   : > { %v449_v58 = vmul.f32 %v369_v55, %v369_v55 }
 0x121   : > { %729 = vmatpush3.bf16.msk.msra.mxu1 %vm728_vm3, %v727_v56 }
 0x122   : > { %v731_v59 = vpack.c.bf16 %v450_v57, %v449_v58  ;;  %730 = vmatprep.subr.bf16.mxu1 %v761_v33 }
 0x124   : > { %685 = vmatmul.mubr.msk.f32.vlgmr.msra.gmra.mrb[0].mxu1 %vm372_vm4, %v764_v60 }
 0x125   : > { %732 = vmatpush3.bf16.msra.mxu1 %v731_v59  ;;  %691 = vmatprep.mubr.msk.f32.mxu1 %vm762_vm0, %v763_v34 }
 0x128   : > { %692 = vmatmul.mubr.msk.f32.vlgmr.msra.gmra.mrb[2].mxu1 %vm372_vm4, %v764_v60 }
 0x1f7   : > { %v442_v62 = vpop.f32.mrb[0].mxu1 }
 0x1f8   : > { %v446_v63 = vadd.f32 %v442_v62, %v371_v61  ;;  %v686_v0 = vpop.f32.mrb[1].mxu1  ;;  %526 = sbr.rel (%p618_p5) target bundleno = 538 (0x21a), region = 44 }
 0x1fa   : > { %447 = vst [vmem:[#allocation2] sm:$0xff] %v446_v63 }
 0x1fb   : > { %v517_v2 = vpop.f32.mrb[2].mxu1 }
 0x1fc   : > { %v521_v3 = vadd.f32 %v517_v2, %v448_v1  ;;  %v693_v4 = vpop.f32.mrb[3].mxu1 }
 0x1fe   : > { %522 = vst [vmem:[#allocation3] sm:$0xff] %v521_v3 }
 0x201   : > { %v527_v5 = vld [vmem:[#allocation2] sm:$0x1] }
 0x202   : > { %v528_v7 = vmul.f32 0.041666668, %v527_v5 }
 0x204   : > { %v531_v9 = vmul.f32 %v528_v7, %v528_v7  ;;  %534 = vst [vmem:[%s896_s5] sm:$0x1] %v528_v7 }
 0x205   : > { %v529_v6 = vld [vmem:[#allocation3] sm:$0x1] }
 0x206   : > { %v530_v8 = vmul.f32 0.041666668, %v529_v6 }
 0x208   : > { %v532_v10 = vsub.f32 %v530_v8, %v531_v9 }
 0x20a   : > { %v533_v11 = vmax.f32 %v532_v10, 0.0 }
 0x20c   : > { %v535_v12 = vadd.f32 1e-05, %v533_v11 }
 0x20e   : > { %750 = vrsqrt.f32 %v535_v12 }
 0x218   : > { %v751_v13 = vpop.eup %750 }
 0x219   : > { %537 = vst [vmem:[%s896_s5 + $0x1] sm:$0x1] %v751_v13 }
 0x21a PF: > { %s16_s18 = sadd.s32 1, %s758_s18  }
 0x21b   : > { %p13_p6 = scmp.ge.s32.totalorder %s16_s18, 4  }
 0x21d   :  { %15 = sbr.rel (!%p13_p6) target bundleno = 1 (0x1), region = 82 }

// kernel: deep_cca_forward.8
= control target key start
LH: loop header
LB: loop body
LE: loop exit
PB: predicated region body
PF: predicated region fallthrough
CT: control target
= control target key end

     0   :  { %s747_s15 = smov 0   ;;  %s837_s0 = inlined_call_operand.vmem [shape: f32[32,128], index: 0, kind: input, shape index: {}]   ;;  %s838_s1 = inlined_call_operand.vmem [shape: f32[128,128], index: 1, kind: input, shape index: {}]   ;;  %s839_s2 = inlined_call_operand.vmem [shape: f32[1,128], index: 2, kind: input, shape index: {}]   ;;  %s840_s3 = inlined_call_operand.vmem [shape: f32[32,128], index: 3, kind: output, shape index: {0}]   ;;  %s841_s4 = inlined_call_operand.vmem [shape: f32[2,128], index: 4, kind: output, shape index: {1}]  }
   0x1 LB: > { %s753_s16 = sadd.s32 4294967295, %s715_s15   ;;  %p563_p0 = scmp.ge.s32.totalorder %s715_s15, 1  ;;  %s715_s15 = sphi %s747_s15, %s15_s15  }
   0x2   : > { %p161_p1 = scmp.lt.s32.totalorder %s715_s15, 3 }
   0x4   : > { %p162_p2 = pnand %p563_p0, %p161_p1 }
   0x5   : > { %s564_s17 = sshll.u32 (!%p162_p2), %s753_s16, 1  ;;  %p568_p4 = scmp.ne.s32.totalorder (!%p162_p2), %s753_s16, 0 }
   0x6   : > { %165 = sbr.rel (%p162_p2) target bundleno = 538 (0x21a), region = 32  ;;  %p188_p3 = scmp.lt.s32.totalorder (!%p162_p2), %s564_s17, 3 }
   0xd   : > { %s843_s17 = smov (!%p188_p3, %s564_s17), 3  ;;  %202 = sbr.rel (%p568_p4) target bundleno = 20 (0x14), region = 36 }
   0xe   : > { %s565_s18 = sshll.u32 %s843_s17, 3  ;;  %v717_v0 = vmov (!%p568_p4), 0.0  }
   0xf   : > { %s761_s21 = scalar_lea.vmem %s837_s0, %s565_s18  ;;  %s766_s24 = scalar_lea.vmem %s840_s3, %s565_s18  ;;  %203 = vst [vmem:[#allocation2] sm:$0xff] (!%p568_p4), %v717_v0  ;;  %204 = vst [vmem:[#allocation3] sm:$0xff] (!%p568_p4), %v717_v0 }
  0x14 PF: > { %v207_v1 = vld [vmem:[%s838_s1] sm:$0xff]  ;;  %v208_v2 = vld [vmem:[%s838_s1 + $0x8] sm:$0xff]  ;;  %v209_v3 = vld [vmem:[%s838_s1 + $0x10] sm:$0xff]  ;;  %v718_v27 = vmov 0.0|0.0   ;;  %vm719_vm0 = vmmov 0   ;;  %v720_v28 = vmov 0.0   ;;  %v316_v33 = vlaneseq }
  0x15   : > { %v651_v4 = vpack.c.bf16 %v208_v2, %v207_v1  ;;  %v210_v5 = vld [vmem:[%s838_s1 + $0x18] sm:$0xff]  ;;  %v211_v7 = vld [vmem:[%s838_s1 + $0x20] sm:$0xff]  ;;  %v212_v8 = vld [vmem:[%s838_s1 + $0x28] sm:$0xff]  ;;  %683 = vmatprep.subr.bf16.mxu1 %v718_v27  ;;  %641 = vmatprep.mubr.msk.f32.mxu1 %vm719_vm0, %v720_v28  ;;  %vm331_vm4 = vcmask 130048   ;;  %v721_v54 = vmov 1.0   ;;  %p575_p5 = scmp.ne.s32.totalorder %s753_s16, 1 }
  0x16   : > { %v655_v6 = vpack.c.bf16 %v210_v5, %v209_v3  ;;  %v659_v9 = vpack.c.bf16 %v212_v8, %v211_v7  ;;  %v205_v10 = vld [vmem:[%s761_s21] sm:$0xff]  ;;  %v213_v11 = vld [vmem:[%s838_s1 + $0x30] sm:$0xff]  ;;  %v214_v12 = vld [vmem:[%s838_s1 + $0x38] sm:$0xff]  ;;  %v317_v37 = vshrl.u32 %v316_v33, 7 }
  0x17   : > { %652 = vmatprep.subr.bf16.mxu0 %v651_v4  ;;  %634 = vmatprep.mubr.f32.mxu0 %v205_v10  ;;  %v663_v13 = vpack.c.bf16 %v214_v12, %v213_v11  ;;  %v215_v14 = vld [vmem:[%s838_s1 + $0x40] sm:$0xff]  ;;  %v216_v15 = vld [vmem:[%s838_s1 + $0x48] sm:$0xff]  ;;  %v217_v17 = vld [vmem:[%s838_s1 + $0x50] sm:$0xff] }
  0x18   : > { %654 = vmatpush3.bf16.msra.mxu0 %v651_v4  ;;  %v667_v16 = vpack.c.bf16 %v216_v15, %v215_v14  ;;  %v218_v18 = vld [vmem:[%s838_s1 + $0x58] sm:$0xff]  ;;  %v219_v20 = vld [vmem:[%s838_s1 + $0x60] sm:$0xff]  ;;  %v220_v21 = vld [vmem:[%s838_s1 + $0x68] sm:$0xff]  ;;  %v318_v38 = vadd.s32 8, %v317_v37 }
  0x19   : > { %656 = vmatprep.subr.bf16.mxu0 %v655_v6  ;;  %v671_v19 = vpack.c.bf16 %v218_v18, %v217_v17  ;;  %v675_v22 = vpack.c.bf16 %v220_v21, %v219_v20  ;;  %v221_v23 = vld [vmem:[%s838_s1 + $0x70] sm:$0xff]  ;;  %v222_v24 = vld [vmem:[%s838_s1 + $0x78] sm:$0xff]  ;;  %v206_v26 = vld [vmem:[%s761_s21 + $0x8] sm:$0xff]  ;;  %s570_s21 = sshll.u32 %s753_s16, 4 }
  0x1a   : > { %v679_v25 = vpack.c.bf16 %v222_v24, %v221_v23  ;;  %v569_v29 = vld [vmem:[%s839_s2] ss:$0 sm:$0xff]  ;;  %v319_v39 = vstv %s570_s21  ;;  %v407_v59 = vld [vmem:[#allocation3] sm:$0xff] }
  0x1b   : > { %v320_v40 = vadd.s32 %v319_v39, %v317_v37  ;;  %v321_v41 = vadd.s32 %v319_v39, %v318_v38  ;;  %v330_v55 = vld [vmem:[#allocation2] sm:$0xff] }
  0x1c   : > { %658 = vmatpush3.bf16.msra.mxu0 %v655_v6 }
  0x1d   : > { %660 = vmatprep.subr.bf16.mxu0 %v659_v9  ;;  %vm322_vm1 = vcmp.lt.s32.totalorder %v320_v40, 24  ;;  %vm323_vm2 = vcmp.lt.s32.totalorder %v321_v41, 24 }
  0x1e   : > { %vm685_vm3 = vmpackc.low %vm323_vm2, %vm322_vm1 }
  0x20   : > { %662 = vmatpush3.bf16.msra.mxu0 %v659_v9 }
  0x21   : > { %664 = vmatprep.subr.bf16.mxu0 %v663_v13 }
  0x24   : > { %666 = vmatpush3.bf16.msra.mxu0 %v663_v13 }
  0x25   : > { %668 = vmatprep.subr.bf16.mxu0 %v667_v16 }
  0x28   : > { %670 = vmatpush3.bf16.msra.mxu0 %v667_v16 }
  0x29   : > { %672 = vmatprep.subr.bf16.mxu0 %v671_v19 }
  0x2c   : > { %674 = vmatpush3.bf16.msra.mxu0 %v671_v19 }
  0x2d   : > { %676 = vmatprep.subr.bf16.mxu0 %v675_v22 }
  0x30   : > { %678 = vmatpush3.bf16.msra.mxu0 %v675_v22 }
  0x31   : > { %680 = vmatprep.subr.bf16.mxu0 %v679_v25 }
  0x34   : > { %682 = vmatpush3.bf16.msra.mxu0 %v679_v25 }
  0x37   : > { %635 = vmatmul.mubr.f32.vlgmr.msra.gmra.mrb[0].mxu0 %v206_v26 }
 0x10a   : > { %v636_v30 = vpop.f32.mrb[0].mxu0 }
 0x10b   : > { %v302_v31 = vadd.f32 %v636_v30, %v569_v29  ;;  %v296_v32 = vpop.f32.mrb[1].mxu0 }
 0x10c   : > { %v297_v34 = vadd.f32 %v569_v29, %v296_v32 }
 0x10d   : > { %v306_v35 = vmul.f32 0.5, %v302_v31 }
 0x10e   : > { %v305_v36 = vmul.f32 0.5, %v297_v34 }
 0x10f   : > { %703 = vtanh.f32 %v306_v35 }
 0x110   : > { %705 = vtanh.f32 %v305_v36 }
 0x119   : > { %v704_v42 = vpop.eup %703 }
 0x11a   : > { %v706_v43 = vpop.eup %705  ;;  %v310_v44 = vadd.f32 1.0, %v704_v42 }
 0x11b   : > { %v309_v45 = vadd.f32 1.0, %v706_v43 }
 0x11c   : > { %v312_v46 = vmul.f32 0.5, %v310_v44 }
 0x11d   : > { %v311_v47 = vmul.f32 0.5, %v309_v45 }
 0x11e   : > { %v329_v48 = vsel %vm323_vm2, %v312_v46, 0.0  ;;  %314 = vst [vmem:[%s766_s24 + $0x8] sm:$0xff] %v312_v46 }
 0x11f   : > { %313 = vst [vmem:[%s766_s24] sm:$0xff] %v311_v47  ;;  %v328_v49 = vsel %vm322_vm1, %v311_v47, 0.0  ;;  %v684_v50 = vpack.c.bf16 %v312_v46, %v311_v47  ;;  %v409_v51 = vmul.f32 %v329_v48, %v329_v48 }
 0x120   : > { %v408_v52 = vmul.f32 %v328_v49, %v328_v49 }
 0x121   : > { %686 = vmatpush3.bf16.msk.msra.mxu1 %vm685_vm3, %v684_v50 }
 0x122   : > { %v688_v53 = vpack.c.bf16 %v409_v51, %v408_v52  ;;  %687 = vmatprep.subr.bf16.mxu1 %v718_v27 }
 0x124   : > { %642 = vmatmul.mubr.msk.f32.vlgmr.msra.gmra.mrb[0].mxu1 %vm331_vm4, %v721_v54 }
 0x125   : > { %689 = vmatpush3.bf16.msra.mxu1 %v688_v53  ;;  %648 = vmatprep.mubr.msk.f32.mxu1 %vm719_vm0, %v720_v28 }
 0x128   : > { %649 = vmatmul.mubr.msk.f32.vlgmr.msra.gmra.mrb[2].mxu1 %vm331_vm4, %v721_v54 }
 0x1f7   : > { %v401_v56 = vpop.f32.mrb[0].mxu1 }
 0x1f8   : > { %v405_v57 = vadd.f32 %v401_v56, %v330_v55  ;;  %v643_v58 = vpop.f32.mrb[1].mxu1  ;;  %485 = sbr.rel (%p575_p5) target bundleno = 538 (0x21a), region = 40 }
 0x1fa   : > { %406 = vst [vmem:[#allocation2] sm:$0xff] %v405_v57 }
 0x1fb   : > { %v476_v60 = vpop.f32.mrb[2].mxu1 }
 0x1fc   : > { %v480_v61 = vadd.f32 %v476_v60, %v407_v59  ;;  %v650_v62 = vpop.f32.mrb[3].mxu1 }
 0x1fe   : > { %481 = vst [vmem:[#allocation3] sm:$0xff] %v480_v61 }
 0x201   : > { %v486_v63 = vld [vmem:[#allocation2] sm:$0x1] }
 0x202   : > { %v487_v1 = vmul.f32 0.041666668, %v486_v63 }
 0x204   : > { %v490_v3 = vmul.f32 %v487_v1, %v487_v1  ;;  %493 = vst [vmem:[%s841_s4] sm:$0x1] %v487_v1 }
 0x205   : > { %v488_v0 = vld [vmem:[#allocation3] sm:$0x1] }
 0x206   : > { %v489_v2 = vmul.f32 0.041666668, %v488_v0 }
 0x208   : > { %v491_v4 = vsub.f32 %v489_v2, %v490_v3 }
 0x20a   : > { %v492_v5 = vmax.f32 %v491_v4, 0.0 }
 0x20c   : > { %v494_v6 = vadd.f32 1e-05, %v492_v5 }
 0x20e   : > { %707 = vrsqrt.f32 %v494_v6 }
 0x218   : > { %v708_v7 = vpop.eup %707 }
 0x219   : > { %496 = vst [vmem:[%s841_s4 + $0x1] sm:$0x1] %v708_v7 }
 0x21a PF: > { %s15_s15 = sadd.s32 1, %s715_s15  }
 0x21b   : > { %p12_p6 = scmp.ge.s32.totalorder %s15_s15, 4  }
 0x21d   :  { %14 = sbr.rel (!%p12_p6) target bundleno = 1 (0x1), region = 78 }

</bundles_post_ra>
